<compile_context>
chip_gen: v5e
topology: v5e:2x2
jax: 0.10.0
libtpu: 0.0.40
codegen_flags: <defaults>
</compile_context>

<pallas_src>
import jax
import jax.numpy as jnp
from jax.experimental import pallas as pl
from jax.experimental.pallas import tpu as pltpu


# ---------------------------------------------------------------------------
# Kernel
# ---------------------------------------------------------------------------
def _actor_encoder_kernel(o_ref, h_ref, z_ref,
                          w0_ref, wh_ref, w4_ref, w5_ref, b_ref,
                          het_ref, out_ref):
    """Fused 3-branch MLP (block-diag layers 1..5) + per-agent het heads.

    o_ref/h_ref/z_ref : (N, d_obs)/(N, d_beliefs)/(N, d_comm_state)  f32
    w0_ref            : (input_dim, 3*128)        bf16  (layer 0, branches concat)
    wh_ref            : (3, 3*128, 3*128)         bf16  (layers 1..3, block-diag)
    w4_ref            : (3*128, 3*64)             bf16  (layer 4, block-diag)
    w5_ref            : (3*64, 3*d_het)           bf16  (layer 5, block-diag)
    b_ref             : (6, 3*128)                bf16  (per-layer biases, padded rows)
    het_ref           : (N, d_out_total, 3*d_het) bf16  (block-diag, pre-transposed)
    out_ref           : (N, 128)                  f32   (lane-dense output slab)
    Single invocation, everything resident in VMEM, no grid.
    """
    f32, bf16 = jnp.float32, jnp.bfloat16

    # --- layer 0: in-kernel lane concat + single wide dot --------------------
    x = jnp.concatenate([o_ref[...], h_ref[...], z_ref[...]], axis=1).astype(bf16)
    d0 = w0_ref.shape[1]
    a = (jnp.dot(x, w0_ref[...], preferred_element_type=f32)
         + b_ref[0:1, :d0].astype(f32))
    a = jnp.maximum(a, 0.0)                                   # ReLU, f32 activations

    # --- layers 1..3: block-diag (384, 384) --------------------------------
    for l in range(wh_ref.shape[0]):
        a = (jnp.dot(a.astype(bf16), wh_ref[l], preferred_element_type=f32)
             + b_ref[l + 1:l + 2, :].astype(f32))
        a = jnp.maximum(a, 0.0)

    # --- layer 4: block-diag (384, 192) -------------------------------------
    d4 = w4_ref.shape[1]
    a = (jnp.dot(a.astype(bf16), w4_ref[...], preferred_element_type=f32)
         + b_ref[4:5, :d4].astype(f32))
    a = jnp.maximum(a, 0.0)

    # --- layer 5: block-diag (192, 48), linear (no ReLU) ---------------------
    d5 = w5_ref.shape[1]
    a = (jnp.dot(a.astype(bf16), w5_ref[...], preferred_element_type=f32)
         + b_ref[5:6, :d5].astype(f32))                        # (N, 3*d_het)

    # --- heterogeneous heads: per-agent linear maps, fused block-diag -------
    # het[n, j, k] pairs output row j with lane k of `a` (lane reduce; no
    # sublane relayout of a's feature axis).
    het = het_ref[...].astype(f32)                             # (N, out_total, 3*d_het)
    y = jnp.sum(a[:, None, :] * het, axis=-1)                  # (N, out_total)

    # --- single unmasked full-width store ------------------------------------
    n, total = y.shape
    pad = out_ref.shape[1] - total
    if pad > 0:
        y = jnp.concatenate([y, jnp.zeros((n, pad), f32)], axis=1)
    out_ref[...] = y


# ---------------------------------------------------------------------------
# One-time weight preparation (fuse branches, pack, cast to bf16)
# ---------------------------------------------------------------------------
def _block_diag(mats):
    rows = sum(m.shape[0] for m in mats)
    cols = sum(m.shape[1] for m in mats)
    out = jnp.zeros((rows, cols), mats[0].dtype)
    r = c = 0
    for m in mats:
        out = out.at[r:r + m.shape[0], c:c + m.shape[1]].set(m)
        r += m.shape[0]
        c += m.shape[1]
    return out


def prepare_encoder_params(policy_params, belief_params, encoder_params):
    """Fuse layer 0 across branches, block-diag layers 1..5, pack biases; bf16."""
    branches = (policy_params, belief_params, encoder_params)
    n_layers = len(policy_params)                              # 6
    cast = lambda a: a.astype(jnp.bfloat16)

    # Layer 0: concat along the output dim -> (input_dim, 3*128).
    w0 = jnp.concatenate([p[0][0] for p in branches], axis=1)

    # Layers 1..5: block-diagonal across branches.
    bd = [_block_diag([p[l][0] for p in branches]) for l in range(1, n_layers)]
    wh = jnp.stack(bd[:3])                                     # (3, 384, 384)
    w4 = bd[3]                                                 # (384, 192)
    w5 = bd[4]                                                 # (192, 48)

    # Biases: one row per layer (branches concatenated), zero-padded to 384.
    biases = [jnp.concatenate([p[l][1] for p in branches]) for l in range(n_layers)]
    maxw = max(b.shape[0] for b in biases)
    bias_pack = jnp.stack([jnp.pad(b, (0, maxw - b.shape[0])) for b in biases])

    return dict(w0=cast(w0), wh=cast(wh), w4=cast(w4), w5=cast(w5),
                bias=cast(bias_pack))


def _pack_het(p_weights, b_weights, e_weights):
    """Per-call het packing: block-diag, transposed -> (N, out_total, 3*d_het) bf16.

    Branch b's (N, d_het, d_out_b) weights land at output rows
    [off_b : off_b + d_out_b] and lanes [b*d_het : (b+1)*d_het].
    """
    ws = (p_weights, b_weights, e_weights)
    d_het = p_weights.shape[1]
    blocks = []
    for bi, w in enumerate(ws):
        wt = jnp.swapaxes(w, 1, 2)                             # (N, d_out_b, d_het)
        wt = jnp.pad(wt, ((0, 0), (0, 0),
                          (bi * d_het, (len(ws) - 1 - bi) * d_het)))
        blocks.append(wt)
    return jnp.concatenate(blocks, axis=1).astype(jnp.bfloat16)


# ---------------------------------------------------------------------------
# Forward wrapper
# ---------------------------------------------------------------------------
def actor_encoder_forward(o, h, z, p_weights, b_weights, e_weights, prepared):
    """Pallas-backed equivalent of ActorEncoder.forward (single fused kernel)."""
    het = _pack_het(p_weights, b_weights, e_weights)
    n = o.shape[0]
    d_q = p_weights.shape[-1]
    d_h = b_weights.shape[-1]
    d_z = e_weights.shape[-1]
    total = d_q + d_h + d_z
    slab_w = pl.cdiv(total, 128) * 128                         # lane-dense output slab

    args = (o, h, z, prepared["w0"], prepared["wh"], prepared["w4"],
            prepared["w5"], prepared["bias"], het)
    slab = pl.pallas_call(
        _actor_encoder_kernel,
        out_shape=jax.ShapeDtypeStruct((n, slab_w), jnp.float32),
        in_specs=[pl.BlockSpec(memory_space=pltpu.MemorySpace.VMEM)] * len(args),
        out_specs=pl.BlockSpec(memory_space=pltpu.MemorySpace.VMEM),
        compiler_params=pltpu.CompilerParams(vmem_limit_bytes=16 << 20),
    )(*args)

    Q = slab[:, :d_q]
    h_new = slab[:, d_q:d_q + d_h]
    ze = slab[:, d_q + d_h:total]
    return Q, h_new, ze


# ---------------------------------------------------------------------------
# Test harness
# ---------------------------------------------------------------------------
def init_mlp_params(key, dims):
    """Deterministic Glorot-ish init for a list of Linear layers (f32 masters)."""
    params = []
    for d_in, d_out in zip(dims[:-1], dims[1:]):
        key, kw, kb = jax.random.split(key, 3)
        scale = 1.0 / jnp.sqrt(jnp.float32(d_in))
        w = jax.random.uniform(kw, (d_in, d_out), jnp.float32, -scale, scale)
        b = jax.random.uniform(kb, (d_out,), jnp.float32, -scale, scale)
        params.append((w, b))
    return key, params


def _reference_forward(x, params, het_w):
    """Pure-JAX reference mirroring the kernel's bf16-weight / f32-accum numerics."""
    a = x
    nl = len(params)
    for i, (w, b) in enumerate(params):
        a = (jnp.dot(a.astype(jnp.bfloat16), w.astype(jnp.bfloat16),
                     preferred_element_type=jnp.float32)
             + b.astype(jnp.bfloat16).astype(jnp.float32))
        if i < nl - 1:
            a = jnp.maximum(a, 0.0)
    het = het_w.astype(jnp.bfloat16).astype(jnp.float32)
    return jnp.einsum("nd,nde->ne", a, het, precision=jax.lax.Precision.HIGHEST)


if __name__ == "__main__":
    # Small, deterministic config (ParameterSettings stand-in).
    num_agents = 8
    d_obs = 12
    d_beliefs = 10
    d_comm_state = 10
    d_het_weights = 16
    n_actions = 8

    input_dim = d_obs + d_beliefs + d_comm_state
    dims = [input_dim, 128, 128, 128, 128, 64, d_het_weights]

    key = jax.random.PRNGKey(0)
    key, policy_params = init_mlp_params(key, dims)
    key, belief_params = init_mlp_params(key, dims)
    key, encoder_params = init_mlp_params(key, dims)

    prepared = prepare_encoder_params(policy_params, belief_params, encoder_params)

    key, ko, kh, kz, kp, kb, ke = jax.random.split(key, 7)
    o = jax.random.normal(ko, (num_agents, d_obs), jnp.float32)
    h = jax.random.normal(kh, (num_agents, d_beliefs), jnp.float32)
    z = jax.random.normal(kz, (num_agents, d_comm_state), jnp.float32)
    p_weights = jax.random.normal(kp, (num_agents, d_het_weights, n_actions),
                                  jnp.float32) * 0.1
    b_weights = jax.random.normal(kb, (num_agents, d_het_weights, d_beliefs),
                                  jnp.float32) * 0.1
    e_weights = jax.random.normal(ke, (num_agents, d_het_weights, d_comm_state),
                                  jnp.float32) * 0.1

    fwd = jax.jit(actor_encoder_forward)
    Q, h_new, ze = fwd(o, h, z, p_weights, b_weights, e_weights, prepared)
    jax.block_until_ready((Q, h_new, ze))

    # Sanity check against a plain-JAX reference with matching quantization.
    x = jnp.concatenate([o, h, z], axis=1)
    Q_ref = _reference_forward(x, policy_params, p_weights)
    h_ref = _reference_forward(x, belief_params, b_weights)
    z_ref = _reference_forward(x, encoder_params, e_weights)
    assert jnp.allclose(Q, Q_ref, atol=2e-3, rtol=2e-3), float(jnp.max(jnp.abs(Q - Q_ref)))
    assert jnp.allclose(h_new, h_ref, atol=2e-3, rtol=2e-3), float(jnp.max(jnp.abs(h_new - h_ref)))
    assert jnp.allclose(ze, z_ref, atol=2e-3, rtol=2e-3), float(jnp.max(jnp.abs(ze - z_ref)))

    print("KERNEL_OK")
</pallas_src>

<mosaic_0001>
module attributes {stable_mosaic.version = 11 : i64} {
  func.func @_actor_encoder_kernel(%arg0: memref<8x12xf32, #tpu.memory_space<vmem>>, %arg1: memref<8x10xf32, #tpu.memory_space<vmem>>, %arg2: memref<8x10xf32, #tpu.memory_space<vmem>>, %arg3: memref<32x384xbf16, #tpu.memory_space<vmem>>, %arg4: memref<3x384x384xbf16, #tpu.memory_space<vmem>>, %arg5: memref<384x192xbf16, #tpu.memory_space<vmem>>, %arg6: memref<192x48xbf16, #tpu.memory_space<vmem>>, %arg7: memref<6x384xbf16, #tpu.memory_space<vmem>>, %arg8: memref<8x28x48xbf16, #tpu.memory_space<vmem>>, %arg9: memref<8x128xf32, #tpu.memory_space<vmem>>) attributes {dimension_semantics = [], scalar_prefetch = 0 : i64, scratch_operands = 0 : i64, tpu.core_type = #tpu.core_type<tc>} {
    %c0 = arith.constant 0 : index
    %c0_0 = arith.constant 0 : index
    %0 = vector.load %arg0[%c0, %c0_0] : memref<8x12xf32, #tpu.memory_space<vmem>>, vector<8x12xf32>
    %c0_1 = arith.constant 0 : index
    %c0_2 = arith.constant 0 : index
    %1 = vector.load %arg1[%c0_1, %c0_2] : memref<8x10xf32, #tpu.memory_space<vmem>>, vector<8x10xf32>
    %c0_3 = arith.constant 0 : index
    %c0_4 = arith.constant 0 : index
    %2 = vector.load %arg2[%c0_3, %c0_4] : memref<8x10xf32, #tpu.memory_space<vmem>>, vector<8x10xf32>
    %3 = tpu.concatenate %0, %1, %2 in 1 : vector<8x12xf32>, vector<8x10xf32>, vector<8x10xf32> -> vector<8x32xf32>
    %4 = arith.truncf %3 : vector<8x32xf32> to vector<8x32xbf16>
    %c0_5 = arith.constant 0 : index
    %c0_6 = arith.constant 0 : index
    %5 = vector.load %arg3[%c0_5, %c0_6] : memref<32x384xbf16, #tpu.memory_space<vmem>>, vector<32x384xbf16>
    %cst = arith.constant dense<0.000000e+00> : vector<8x384xf32>
    %6 = tpu.matmul %4, %5, %cst {dimension_numbers = #tpu.dot_dimension_numbers<[1], [0], [0], [1], [0, 0, 1, 1], [], []>} : vector<8x32xbf16>, vector<32x384xbf16>, vector<8x384xf32> -> vector<8x384xf32>
    %c0_7 = arith.constant 0 : index
    %c0_8 = arith.constant 0 : index
    %7 = vector.load %arg7[%c0_7, %c0_8] : memref<6x384xbf16, #tpu.memory_space<vmem>>, vector<1x384xbf16>
    %8 = arith.extf %7 : vector<1x384xbf16> to vector<1x384xf32>
    %9 = vector.broadcast %8 : vector<1x384xf32> to vector<8x384xf32>
    %10 = arith.addf %6, %9 : vector<8x384xf32>
    %cst_9 = arith.constant 0.000000e+00 : f32
    %11 = vector.broadcast %cst_9 : f32 to vector<8x384xf32>
    %12 = arith.maximumf %10, %11 : vector<8x384xf32>
    %13 = arith.truncf %12 : vector<8x384xf32> to vector<8x384xbf16>
    %c0_10 = arith.constant 0 : index
    %c0_11 = arith.constant 0 : index
    %c0_12 = arith.constant 0 : index
    %14 = vector.load %arg4[%c0_10, %c0_11, %c0_12] : memref<3x384x384xbf16, #tpu.memory_space<vmem>>, vector<1x384x384xbf16>
    %15 = vector.shape_cast %14 : vector<1x384x384xbf16> to vector<384x384xbf16>
    %cst_13 = arith.constant dense<0.000000e+00> : vector<8x384xf32>
    %16 = tpu.matmul %13, %15, %cst_13 {dimension_numbers = #tpu.dot_dimension_numbers<[1], [0], [0], [1], [0, 0, 1, 1], [], []>} : vector<8x384xbf16>, vector<384x384xbf16>, vector<8x384xf32> -> vector<8x384xf32>
    %c1 = arith.constant 1 : index
    %c0_14 = arith.constant 0 : index
    %17 = vector.load %arg7[%c1, %c0_14] : memref<6x384xbf16, #tpu.memory_space<vmem>>, vector<1x384xbf16>
    %18 = arith.extf %17 : vector<1x384xbf16> to vector<1x384xf32>
    %19 = vector.broadcast %18 : vector<1x384xf32> to vector<8x384xf32>
    %20 = arith.addf %16, %19 : vector<8x384xf32>
    %cst_15 = arith.constant 0.000000e+00 : f32
    %21 = vector.broadcast %cst_15 : f32 to vector<8x384xf32>
    %22 = arith.maximumf %20, %21 : vector<8x384xf32>
    %23 = arith.truncf %22 : vector<8x384xf32> to vector<8x384xbf16>
    %c1_16 = arith.constant 1 : index
    %c0_17 = arith.constant 0 : index
    %c0_18 = arith.constant 0 : index
    %24 = vector.load %arg4[%c1_16, %c0_17, %c0_18] : memref<3x384x384xbf16, #tpu.memory_space<vmem>>, vector<1x384x384xbf16>
    %25 = vector.shape_cast %24 : vector<1x384x384xbf16> to vector<384x384xbf16>
    %cst_19 = arith.constant dense<0.000000e+00> : vector<8x384xf32>
    %26 = tpu.matmul %23, %25, %cst_19 {dimension_numbers = #tpu.dot_dimension_numbers<[1], [0], [0], [1], [0, 0, 1, 1], [], []>} : vector<8x384xbf16>, vector<384x384xbf16>, vector<8x384xf32> -> vector<8x384xf32>
    %c2 = arith.constant 2 : index
    %c0_20 = arith.constant 0 : index
    %27 = vector.load %arg7[%c2, %c0_20] : memref<6x384xbf16, #tpu.memory_space<vmem>>, vector<1x384xbf16>
    %28 = arith.extf %27 : vector<1x384xbf16> to vector<1x384xf32>
    %29 = vector.broadcast %28 : vector<1x384xf32> to vector<8x384xf32>
    %30 = arith.addf %26, %29 : vector<8x384xf32>
    %cst_21 = arith.constant 0.000000e+00 : f32
    %31 = vector.broadcast %cst_21 : f32 to vector<8x384xf32>
    %32 = arith.maximumf %30, %31 : vector<8x384xf32>
    %33 = arith.truncf %32 : vector<8x384xf32> to vector<8x384xbf16>
    %c2_22 = arith.constant 2 : index
    %c0_23 = arith.constant 0 : index
    %c0_24 = arith.constant 0 : index
    %34 = vector.load %arg4[%c2_22, %c0_23, %c0_24] : memref<3x384x384xbf16, #tpu.memory_space<vmem>>, vector<1x384x384xbf16>
    %35 = vector.shape_cast %34 : vector<1x384x384xbf16> to vector<384x384xbf16>
    %cst_25 = arith.constant dense<0.000000e+00> : vector<8x384xf32>
    %36 = tpu.matmul %33, %35, %cst_25 {dimension_numbers = #tpu.dot_dimension_numbers<[1], [0], [0], [1], [0, 0, 1, 1], [], []>} : vector<8x384xbf16>, vector<384x384xbf16>, vector<8x384xf32> -> vector<8x384xf32>
    %c3 = arith.constant 3 : index
    %c0_26 = arith.constant 0 : index
    %37 = vector.load %arg7[%c3, %c0_26] : memref<6x384xbf16, #tpu.memory_space<vmem>>, vector<1x384xbf16>
    %38 = arith.extf %37 : vector<1x384xbf16> to vector<1x384xf32>
    %39 = vector.broadcast %38 : vector<1x384xf32> to vector<8x384xf32>
    %40 = arith.addf %36, %39 : vector<8x384xf32>
    %cst_27 = arith.constant 0.000000e+00 : f32
    %41 = vector.broadcast %cst_27 : f32 to vector<8x384xf32>
    %42 = arith.maximumf %40, %41 : vector<8x384xf32>
    %43 = arith.truncf %42 : vector<8x384xf32> to vector<8x384xbf16>
    %c0_28 = arith.constant 0 : index
    %c0_29 = arith.constant 0 : index
    %44 = vector.load %arg5[%c0_28, %c0_29] : memref<384x192xbf16, #tpu.memory_space<vmem>>, vector<384x192xbf16>
    %cst_30 = arith.constant dense<0.000000e+00> : vector<8x192xf32>
    %45 = tpu.matmul %43, %44, %cst_30 {dimension_numbers = #tpu.dot_dimension_numbers<[1], [0], [0], [1], [0, 0, 1, 1], [], []>} : vector<8x384xbf16>, vector<384x192xbf16>, vector<8x192xf32> -> vector<8x192xf32>
    %c4 = arith.constant 4 : index
    %c0_31 = arith.constant 0 : index
    %46 = vector.load %arg7[%c4, %c0_31] : memref<6x384xbf16, #tpu.memory_space<vmem>>, vector<1x192xbf16>
    %47 = arith.extf %46 : vector<1x192xbf16> to vector<1x192xf32>
    %48 = vector.broadcast %47 : vector<1x192xf32> to vector<8x192xf32>
    %49 = arith.addf %45, %48 : vector<8x192xf32>
    %cst_32 = arith.constant 0.000000e+00 : f32
    %50 = vector.broadcast %cst_32 : f32 to vector<8x192xf32>
    %51 = arith.maximumf %49, %50 : vector<8x192xf32>
    %52 = arith.truncf %51 : vector<8x192xf32> to vector<8x192xbf16>
    %c0_33 = arith.constant 0 : index
    %c0_34 = arith.constant 0 : index
    %53 = vector.load %arg6[%c0_33, %c0_34] : memref<192x48xbf16, #tpu.memory_space<vmem>>, vector<192x48xbf16>
    %cst_35 = arith.constant dense<0.000000e+00> : vector<8x48xf32>
    %54 = tpu.matmul %52, %53, %cst_35 {dimension_numbers = #tpu.dot_dimension_numbers<[1], [0], [0], [1], [0, 0, 1, 1], [], []>} : vector<8x192xbf16>, vector<192x48xbf16>, vector<8x48xf32> -> vector<8x48xf32>
    %c5 = arith.constant 5 : index
    %c0_36 = arith.constant 0 : index
    %55 = vector.load %arg7[%c5, %c0_36] : memref<6x384xbf16, #tpu.memory_space<vmem>>, vector<1x48xbf16>
    %56 = arith.extf %55 : vector<1x48xbf16> to vector<1x48xf32>
    %57 = vector.broadcast %56 : vector<1x48xf32> to vector<8x48xf32>
    %58 = arith.addf %54, %57 : vector<8x48xf32>
    %c0_37 = arith.constant 0 : index
    %c0_38 = arith.constant 0 : index
    %c0_39 = arith.constant 0 : index
    %59 = vector.load %arg8[%c0_37, %c0_38, %c0_39] : memref<8x28x48xbf16, #tpu.memory_space<vmem>>, vector<8x28x48xbf16>
    %60 = arith.extf %59 : vector<8x28x48xbf16> to vector<8x28x48xf32>
    %61 = vector.shape_cast %58 : vector<8x48xf32> to vector<8x1x48xf32>
    %62 = vector.broadcast %61 : vector<8x1x48xf32> to vector<8x28x48xf32>
    %63 = arith.mulf %62, %60 : vector<8x28x48xf32>
    %cst_40 = arith.constant dense<0.000000e+00> : vector<8x28xf32>
    %64 = vector.multi_reduction <add>, %63, %cst_40 [2] : vector<8x28x48xf32> to vector<8x28xf32>
    %cst_41 = arith.constant 0.000000e+00 : f32
    %65 = vector.broadcast %cst_41 : f32 to vector<8x100xf32>
    %66 = tpu.concatenate %64, %65 in 1 : vector<8x28xf32>, vector<8x100xf32> -> vector<8x128xf32>
    %c0_42 = arith.constant 0 : index
    %c0_43 = arith.constant 0 : index
    %67 = vector.load %arg9[%c0_42, %c0_43] : memref<8x128xf32, #tpu.memory_space<vmem>>, vector<8x128xf32>
    tpu.vector_store %arg9[%c0_42, %c0_43], %66 {strides = array<i32>} : memref<8x128xf32, #tpu.memory_space<vmem>>, vector<8x128xf32>,
    return
  }
}

</mosaic_0001>

<bundles_post_ra>
// kernel: actor_encoder_forward.1
= control target key start
LH: loop header
LB: loop body
LE: loop exit
PB: predicated region body
PF: predicated region fallthrough
CT: control target
= control target key end

     0   :  { %14 = vsyncpa [#allocation3], 0  ;;  %s4311_s12 = smov [#allocation2]   ;;  %s4312_s14 = smov 192   ;;  %s5078_s0 = inlined_call_operand.vmem [shape: f32[8,12], index: 0, kind: input, shape index: {}]   ;;  %s5079_s1 = inlined_call_operand.vmem [shape: f32[8,10], index: 1, kind: input, shape index: {}]   ;;  %s5080_s2 = inlined_call_operand.vmem [shape: f32[8,10], index: 2, kind: input, shape index: {}]   ;;  %s5081_s3 = inlined_call_operand.vmem [shape: bf16[32,384], index: 3, kind: input, shape index: {}]   ;;  %s5082_s4 = inlined_call_operand.hbm [shape: bf16[3,384,384], index: 4, kind: input, shape index: {}]   ;;  %s5083_s5 = inlined_call_operand.vmem [shape: bf16[384,192], index: 5, kind: input, shape index: {}]   ;;  %s5084_s6 = inlined_call_operand.vmem [shape: bf16[192,48], index: 6, kind: input, shape index: {}]   ;;  %s5085_s7 = inlined_call_operand.vmem [shape: bf16[6,384], index: 7, kind: input, shape index: {}]   ;;  %s5086_s8 = inlined_call_operand.vmem [shape: bf16[8,28,48], index: 8, kind: input, shape index: {}]   ;;  %s5087_s9 = inlined_call_operand.vmem [shape: f32[8,128], index: 9, kind: output, shape index: {}]  }
   0x1   :  { %s27_s11 = sshll.u32 %s5082_s4, 4  ;;  %s29_s13 = sshll.u32 %s4311_s12, 4  ;;  %s28_s11 = int_to_ptr.hbm [resolvable:$true] %s27_s11  ;;  %s30_s13 = int_to_ptr.vmem [resolvable:$true] %s29_s13 }
   0x2   :  { %s4313_s15 = smov 12  }
   0x3   :  { %35 = dma.hbm_to_vmem [thread:$0]  %s28_s11, 27648, %s30_s13, [#allocation3], %s4312_s14, %s4312_s14, %s4313_s15  }
   0x4   :  { %4309 = dma.done.wait [#allocation3], 27648  }
   0x5   :  { %4310 = vsyncadd [#allocation3], 4294939648  ;;  %v50_v0 = vld [vmem:[%s5079_s1] sm:$0xff]  ;;  %s4314_s20 = smov 22   ;;  %v2842_v2 = vld [vmem:[%s5081_s3 + $0x18] sm:$0xf] }
   0x6   :  { %53 = vrot.lane.b32.xlu0 %v50_v0, %s4313_s15  ;;  %v51_v1 = vld [vmem:[%s5080_s2] sm:$0xff]  ;;  %v3963_v4 = vld [vmem:[%s5081_s3 + $0x1c] sm:$0xf]  ;;  %v2844_v6 = vld [vmem:[%s5081_s3 + $0x24] sm:$0xf0]  ;;  %vm60_vm0 = vcmask 97280  }
   0x7   :  { %v3964_v3 = vld [vmem:[%s5081_s3 + $0x20] sm:$0xf0]  ;;  %v2847_v7 = vor.u32 %v3963_v4, %v2844_v6  ;;  %v2830_v8 = vld [vmem:[%s5081_s3] sm:$0xf]  ;;  %v3961_v9 = vld [vmem:[%s5081_s3 + $0x8] sm:$0xf0] }
   0x8   :  { %v2843_v5 = vor.u32 %v3964_v3, %v2842_v2  ;;  %v3960_v10 = vld [vmem:[%s5081_s3 + $0x4] sm:$0xf]  ;;  %v2831_v11 = vor.u32 %v3961_v9, %v2830_v8  ;;  %v2832_v12 = vld [vmem:[%s5081_s3 + $0xc] sm:$0xf0]  ;;  %v2850_v14 = vld [vmem:[%s5081_s3 + $0x20] sm:$0xf] }
   0x9   :  { %136 = vmatpush.bf16.msra.mxu1 %v2847_v7  ;;  %v2835_v13 = vor.u32 %v3960_v10, %v2832_v12  ;;  %v3965_v15 = vld [vmem:[%s5081_s3 + $0x28] sm:$0xf0]  ;;  %v2838_v16 = vld [vmem:[%s5081_s3 + $0x8] sm:$0xf]  ;;  %v3962_v18 = vld [vmem:[%s5081_s3 + $0x10] sm:$0xf0] }
   0xa   :  { %123 = vmatpush.bf16.msra.mxu2 %v2843_v5  ;;  %v2851_v17 = vor.u32 %v3965_v15, %v2850_v14  ;;  %v2839_v19 = vor.u32 %v3962_v18, %v2838_v16  ;;  %v2941_v20 = vld [vmem:[#allocation2 + $0xa8] sm:$0xf]  ;;  %v3988_v21 = vld [vmem:[#allocation2 + $0xb0] sm:$0xf0]  ;;  %v2929_v22 = vld [vmem:[#allocation2 + $0x90] sm:$0xf] }
   0xb   :  { %v2942_v23 = vor.u32 %v3988_v21, %v2941_v20  ;;  %v3985_v24 = vld [vmem:[#allocation2 + $0x98] sm:$0xf0]  ;;  %v3037_v25 = vld [vmem:[#allocation2 + $0x168] sm:$0xf]  ;;  %v4012_v27 = vld [vmem:[#allocation2 + $0x170] sm:$0xf0] }
   0xc   :  { %v2930_v26 = vor.u32 %v3985_v24, %v2929_v22  ;;  %v2917_v29 = vld [vmem:[#allocation2 + $0x78] sm:$0xf]  ;;  %v3982_v30 = vld [vmem:[#allocation2 + $0x80] sm:$0xf0]  ;;  %v3038_v31 = vor.u32 %v4012_v27, %v3037_v25  ;;  %v3025_v32 = vld [vmem:[#allocation2 + $0x150] sm:$0xf] }
   0xd   :  { %137 = vmatpush.bf16.msra.mxu1 %v2835_v13  ;;  %645 = vmatpush.bf16.msra.mxu3 %v2942_v23  ;;  %v4009_v33 = vld [vmem:[#allocation2 + $0x158] sm:$0xf0]  ;;  %v2918_v35 = vor.u32 %v3982_v30, %v2917_v29  ;;  %v3013_v36 = vld [vmem:[#allocation2 + $0x138] sm:$0xf]  ;;  %v4006_v37 = vld [vmem:[#allocation2 + $0x140] sm:$0xf0] }
   0xe   :  { %57 = vrot.lane.b32.xlu0 %v51_v1, %s4314_s20  ;;  %124 = vmatpush.bf16.msra.mxu2 %v2831_v11  ;;  %v3026_v34 = vor.u32 %v4009_v33, %v3025_v32  ;;  %v2905_v38 = vld [vmem:[#allocation2 + $0x60] sm:$0xf]  ;;  %v3979_v39 = vld [vmem:[#allocation2 + $0x68] sm:$0xf0]  ;;  %vm62_vm1 = vcmask 179200   ;;  %v3014_v43 = vor.u32 %v4006_v37, %v3013_v36  ;;  %vm113_vm2 = vcmask 261120  }
   0xf   :  { %658 = vmatpush.bf16.msra.mxu0 %v3038_v31  ;;  %v49_v40 = vld [vmem:[%s5078_s0] sm:$0xff]  ;;  %v3987_v41 = vld [vmem:[#allocation2 + $0xac] sm:$0xf]  ;;  %v2943_v42 = vld [vmem:[#allocation2 + $0xb4] sm:$0xf0]  ;;  %v2906_v45 = vor.u32 %v3979_v39, %v2905_v38  ;;  %vm2461_vm3 = vcmask 523264  }
  0x10   :  { %v3001_v44 = vld [vmem:[#allocation2 + $0x120] sm:$0xf]  ;;  %v4003_v46 = vld [vmem:[#allocation2 + $0x128] sm:$0xf0]  ;;  %v3133_v47 = vld [vmem:[#allocation2 + $0x228] sm:$0xf]  ;;  %v2946_v55 = vor.u32 %v3987_v41, %v2943_v42 }
  0x11   :  { %646 = vmatpush.bf16.msra.mxu3 %v2930_v26  ;;  %v4036_v48 = vld [vmem:[#allocation2 + $0x230] sm:$0xf0]  ;;  %v2893_v51 = vld [vmem:[#allocation2 + $0x48] sm:$0xf]  ;;  %v2931_v58 = vld [vmem:[#allocation2 + $0x9c] sm:$0xf0]  ;;  %v3002_v59 = vor.u32 %v4003_v46, %v3001_v44 }
  0x12   :  { %149 = vmatpush.bf16.msrb.mxu2 %v2851_v17  ;;  %v3976_v52 = vld [vmem:[#allocation2 + $0x50] sm:$0xf0]  ;;  %v3134_v53 = vor.u32 %v4036_v48, %v3133_v47  ;;  %v3121_v60 = vld [vmem:[#allocation2 + $0x210] sm:$0xf]  ;;  %v4033_v61 = vld [vmem:[#allocation2 + $0x218] sm:$0xf0] }
  0x13   :  { %659 = vmatpush.bf16.msra.mxu0 %v3026_v34  ;;  %v3984_v56 = vld [vmem:[#allocation2 + $0x94] sm:$0xf]  ;;  %v2894_v62 = vor.u32 %v3976_v52, %v2893_v51  ;;  %v2989_v63 = vld [vmem:[#allocation2 + $0x108] sm:$0xf]  ;;  %v3122_v1 = vor.u32 %v4033_v61, %v3121_v60  ;;  %v2881_v2 = vld [vmem:[#allocation2 + $0x30] sm:$0xf] }
  0x14   :  { %671 = vmatpush.bf16.msrb.mxu1 %v3134_v53  ;;  %v4000_v0 = vld [vmem:[#allocation2 + $0x110] sm:$0xf0]  ;;  %v3973_v3 = vld [vmem:[#allocation2 + $0x38] sm:$0xf0]  ;;  %v3109_v4 = vld [vmem:[#allocation2 + $0x1f8] sm:$0xf]  ;;  %v2934_v5 = vor.u32 %v3984_v56, %v2931_v58 }
  0x15   :  { %647 = vmatpush.bf16.msra.mxu3 %v2918_v35  ;;  %v4030_v6 = vld [vmem:[#allocation2 + $0x200] sm:$0xf0]  ;;  %v3981_v7 = vld [vmem:[#allocation2 + $0x7c] sm:$0xf]  ;;  %v2919_v8 = vld [vmem:[#allocation2 + $0x84] sm:$0xf0]  ;;  %v2990_v9 = vor.u32 %v4000_v0, %v2989_v63  ;;  %v2882_v12 = vor.u32 %v3973_v3, %v2881_v2 }
  0x16   :  { %150 = vmatpush.bf16.msrb.mxu2 %v2839_v19  ;;  %v2977_v10 = vld [vmem:[#allocation2 + $0xf0] sm:$0xf]  ;;  %v3110_v11 = vor.u32 %v4030_v6, %v3109_v4  ;;  %v3997_v13 = vld [vmem:[#allocation2 + $0xf8] sm:$0xf0]  ;;  %v3097_v14 = vld [vmem:[#allocation2 + $0x1e0] sm:$0xf]  ;;  %v2922_v18 = vor.u32 %v3981_v7, %v2919_v8 }
  0x17   :  { %660 = vmatpush.bf16.msra.mxu0 %v3014_v43  ;;  %v4027_v15 = vld [vmem:[#allocation2 + $0x1e8] sm:$0xf0]  ;;  %v2869_v16 = vld [vmem:[#allocation2 + $0x18] sm:$0xf]  ;;  %v3970_v17 = vld [vmem:[#allocation2 + $0x20] sm:$0xf0]  ;;  %v2978_v21 = vor.u32 %v3997_v13, %v2977_v10 }
  0x18   :  { %672 = vmatpush.bf16.msrb.mxu1 %v3122_v1  ;;  %v3978_v19 = vld [vmem:[#allocation2 + $0x64] sm:$0xf]  ;;  %v2907_v20 = vld [vmem:[#allocation2 + $0x6c] sm:$0xf0]  ;;  %v3098_v22 = vor.u32 %v4027_v15, %v3097_v14  ;;  %v2870_v23 = vor.u32 %v3970_v17, %v2869_v16  ;;  %v2965_v24 = vld [vmem:[#allocation2 + $0xd8] sm:$0xf] }
  0x19   :  { %648 = vmatpush.bf16.msra.mxu3 %v2906_v45  ;;  %v3994_v25 = vld [vmem:[#allocation2 + $0xe0] sm:$0xf0]  ;;  %v2857_v26 = vld [vmem:[#allocation2] sm:$0xf]  ;;  %v3967_v27 = vld [vmem:[#allocation2 + $0x8] sm:$0xf0] }
  0x1a   :  { %v4011_v29 = vld [vmem:[#allocation2 + $0x16c] sm:$0xf]  ;;  %v3039_v30 = vld [vmem:[#allocation2 + $0x174] sm:$0xf0]  ;;  %v2966_v33 = vor.u32 %v3994_v25, %v2965_v24  ;;  %v2858_v34 = vor.u32 %v3967_v27, %v2857_v26  ;;  %v2953_v35 = vld [vmem:[#allocation2 + $0xc0] sm:$0xf] }
  0x1b   :  { %661 = vmatpush.bf16.msra.mxu0 %v3002_v59  ;;  %v3975_v31 = vld [vmem:[#allocation2 + $0x4c] sm:$0xf]  ;;  %v2895_v32 = vld [vmem:[#allocation2 + $0x54] sm:$0xf0]  ;;  %v3042_v37 = vor.u32 %v4011_v29, %v3039_v30  ;;  %v4008_v41 = vld [vmem:[#allocation2 + $0x154] sm:$0xf] }
  0x1c   :  { %673 = vmatpush.bf16.msrb.mxu1 %v3110_v11  ;;  %v3991_v36 = vld [vmem:[#allocation2 + $0xc8] sm:$0xf0]  ;;  %v3135_v39 = vld [vmem:[#allocation2 + $0x234] sm:$0xf0]  ;;  %v3027_v42 = vld [vmem:[#allocation2 + $0x15c] sm:$0xf0] }
  0x1d   :  { %649 = vmatpush.bf16.msra.mxu3 %v2894_v62  ;;  %v4035_v38 = vld [vmem:[#allocation2 + $0x22c] sm:$0xf]  ;;  %v3972_v43 = vld [vmem:[#allocation2 + $0x34] sm:$0xf]  ;;  %v2883_v44 = vld [vmem:[#allocation2 + $0x3c] sm:$0xf0]  ;;  %v2954_v45 = vor.u32 %v3991_v36, %v2953_v35  ;;  %v3030_v47 = vor.u32 %v4008_v41, %v3027_v42 }
  0x1e   :  { %v3138_v46 = vor.u32 %v4035_v38, %v3135_v39  ;;  %v2886_v48 = vor.u32 %v3972_v43, %v2883_v44  ;;  %v3969_v51 = vld [vmem:[#allocation2 + $0x1c] sm:$0xf]  ;;  %v2871_v52 = vld [vmem:[#allocation2 + $0x24] sm:$0xf0]  ;;  %v3003_v56 = vld [vmem:[#allocation2 + $0x12c] sm:$0xf0] }
  0x1f   :  { %662 = vmatpush.bf16.msra.mxu0 %v2990_v9  ;;  %v3966_v58 = vld [vmem:[#allocation2 + $0x4] sm:$0xf]  ;;  %v2859_v59 = vld [vmem:[#allocation2 + $0xc] sm:$0xf0]  ;;  %v3085_v0 = vld [vmem:[#allocation2 + $0x1c8] sm:$0xf] }
  0x20   :  { %674 = vmatpush.bf16.msrb.mxu1 %v3098_v22  ;;  %v3045_v60 = vld [vmem:[#allocation2 + $0x170] sm:$0xf]  ;;  %v2862_v62 = vor.u32 %v3966_v58, %v2859_v59  ;;  %v4024_v1 = vld [vmem:[#allocation2 + $0x1d0] sm:$0xf0]  ;;  %v3999_v2 = vld [vmem:[#allocation2 + $0x10c] sm:$0xf] }
  0x21   :  { %650 = vmatpush.bf16.msra.mxu3 %v2882_v12  ;;  %v3086_v3 = vor.u32 %v4024_v1, %v3085_v0  ;;  %v2991_v4 = vld [vmem:[#allocation2 + $0x114] sm:$0xf0]  ;;  %v3123_v6 = vld [vmem:[#allocation2 + $0x21c] sm:$0xf0]  ;;  %v4010_v10 = vld [vmem:[#allocation2 + $0x160] sm:$0xf0] }
  0x22   :  { %v2994_v7 = vor.u32 %v3999_v2, %v2991_v4  ;;  %v3033_v9 = vld [vmem:[#allocation2 + $0x158] sm:$0xf]  ;;  %v3073_v12 = vld [vmem:[#allocation2 + $0x1b0] sm:$0xf]  ;;  %v4021_v13 = vld [vmem:[#allocation2 + $0x1b8] sm:$0xf0] }
  0x23   :  { %663 = vmatpush.bf16.msra.mxu0 %v2978_v21  ;;  %v3034_v11 = vor.u32 %v4010_v10, %v3033_v9  ;;  %v3996_v14 = vld [vmem:[#allocation2 + $0xf4] sm:$0xf]  ;;  %v3074_v15 = vor.u32 %v4021_v13, %v3073_v12  ;;  %v2979_v16 = vld [vmem:[#allocation2 + $0xfc] sm:$0xf0]  ;;  %v4029_v17 = vld [vmem:[#allocation2 + $0x1fc] sm:$0xf] }
  0x24   :  { %675 = vmatpush.bf16.msrb.mxu1 %v3086_v3  ;;  %v3021_v21 = vld [vmem:[#allocation2 + $0x140] sm:$0xf]  ;;  %v4007_v22 = vld [vmem:[#allocation2 + $0x148] sm:$0xf0]  ;;  %v3061_v24 = vld [vmem:[#allocation2 + $0x198] sm:$0xf] }
  0x25   :  { %651 = vmatpush.bf16.msra.mxu3 %v2870_v23  ;;  %v3022_v23 = vor.u32 %v4007_v22, %v3021_v21  ;;  %v4018_v25 = vld [vmem:[#allocation2 + $0x1a0] sm:$0xf0]  ;;  %v3993_v26 = vld [vmem:[#allocation2 + $0xdc] sm:$0xf]  ;;  %v3099_v30 = vld [vmem:[#allocation2 + $0x1ec] sm:$0xf0] }
  0x26   :  { %v3062_v27 = vor.u32 %v4018_v25, %v3061_v24  ;;  %v4026_v29 = vld [vmem:[#allocation2 + $0x1e4] sm:$0xf]  ;;  %v3049_v36 = vld [vmem:[#allocation2 + $0x180] sm:$0xf]  ;;  %v4023_v41 = vld [vmem:[#allocation2 + $0x1cc] sm:$0xf] }
  0x27   :  { %664 = vmatpush.bf16.msra.mxu0 %v2966_v33  ;;  %v3009_v33 = vld [vmem:[#allocation2 + $0x128] sm:$0xf]  ;;  %v3990_v38 = vld [vmem:[#allocation2 + $0xc4] sm:$0xf]  ;;  %v3087_v42 = vld [vmem:[#allocation2 + $0x1d4] sm:$0xf0] }
  0x28   :  { %676 = vmatpush.bf16.msrb.mxu1 %v3074_v15  ;;  %v3090_v44 = vor.u32 %v4023_v41, %v3087_v42  ;;  %v3998_v58 = vld [vmem:[#allocation2 + $0x100] sm:$0xf0]  ;;  %v3983_v0 = vld [vmem:[#allocation2 + $0x88] sm:$0xf0]  ;;  %v2973_v1 = vld [vmem:[#allocation2 + $0xe0] sm:$0xf] }
  0x29   :  { %652 = vmatpush.bf16.msra.mxu3 %v2858_v34  ;;  %v4004_v34 = vld [vmem:[#allocation2 + $0x130] sm:$0xf0]  ;;  %v3995_v2 = vld [vmem:[#allocation2 + $0xe8] sm:$0xf0]  ;;  %v2889_v21 = vld [vmem:[#allocation2 + $0x38] sm:$0xf] }
  0x2a   :  { %v3010_v35 = vor.u32 %v4004_v34, %v3009_v33  ;;  %v2974_v4 = vor.u32 %v3995_v2, %v2973_v1  ;;  %v3980_v10 = vld [vmem:[#allocation2 + $0x70] sm:$0xf0]  ;;  %v3974_v22 = vld [vmem:[#allocation2 + $0x40] sm:$0xf0]  ;;  %v3141_v33 = vld [vmem:[#allocation2 + $0x230] sm:$0xf] }
  0x2b   :  { %665 = vmatpush.bf16.msra.mxu0 %v2954_v45  ;;  %v2949_v45 = vld [vmem:[#allocation2 + $0xb0] sm:$0xf]  ;;  %v3992_v12 = vld [vmem:[#allocation2 + $0xd0] sm:$0xf0]  ;;  %v2890_v24 = vor.u32 %v3974_v22, %v2889_v21  ;;  %v4081_v22 = vld [vmem:[#allocation2 + $0x398] sm:$0xf0] }
  0x2c   :  { %677 = vmatpush.bf16.msrb.mxu1 %v3062_v27  ;;  %v3313_v21 = vld [vmem:[#allocation2 + $0x390] sm:$0xf]  ;;  %vm2611_vm4 = vcmask 392192   ;;  %vm2621_vm5 = vcmask 388096   ;;  %vm2746_vm6 = vcmask 130112   ;;  %vm2750_vm7 = vcmask 195712  }
  0x2d   :  { %697 = vmatpush.bf16.msrb.mxu3 %v3042_v37  ;;  %v4015_v37 = vld [vmem:[#allocation2 + $0x188] sm:$0xf0]  ;;  %vm2754_vm8 = vcmask 261312   ;;  %vm2805_vm9 = vcmask 1041409   ;;  %vm2807_vm10 = vcmask 1042434   ;;  %vm2809_vm11 = vcmask 1043459  }
  0x2e   :  { %v3050_v39 = vor.u32 %v4015_v37, %v3049_v36  ;;  %v2865_v36 = vld [vmem:[#allocation2 + $0x8] sm:$0xf]  ;;  %v3968_v37 = vld [vmem:[#allocation2 + $0x10] sm:$0xf0]  ;;  %vm2811_vm12 = vcmask 1044484   ;;  %vm2813_vm13 = vcmask 1045509  }
  0x2f   :  { %710 = vmatpush.bf16.msrb.mxu0 %v3138_v46  ;;  %v3989_v46 = vld [vmem:[#allocation2 + $0xb8] sm:$0xf0]  ;;  %vm2815_vm14 = vcmask 1046534   ;;  %vm2817_vm15 = vcmask 1047559  }
  0x30   :  { %678 = vmatpush.bf16.msrb.mxu1 %v3050_v39  ;;  %v2866_v39 = vor.u32 %v3968_v37, %v2865_v36  ;;  %v3157_v36 = vld [vmem:[#allocation2 + $0x258] sm:$0xf]  ;;  %v4042_v37 = vld [vmem:[#allocation2 + $0x260] sm:$0xf0] }
  0x31   :  { %698 = vmatpush.bf16.msrb.mxu3 %v3030_v47  ;;  %v2997_v47 = vld [vmem:[#allocation2 + $0x110] sm:$0xf] }
  0x78   :  { %v54_v28 = vpop.permute.xlu0 %53 }
  0x79   :  { %v61_v49 = vsel %vm60_vm0, %v49_v40, %v54_v28  ;;  %v2910_v28 = vor.u32 %v3978_v19, %v2907_v20  ;;  %v2898_v40 = vor.u32 %v3975_v31, %v2895_v32  ;;  %v2982_v19 = vor.u32 %v3996_v14, %v2979_v16  ;;  %v2901_v16 = vld [vmem:[#allocation2 + $0x50] sm:$0xf] }
  0x7a   :  { %v3102_v32 = vor.u32 %v4026_v29, %v3099_v30  ;;  %v3971_v29 = vld [vmem:[#allocation2 + $0x28] sm:$0xf0]  ;;  %vm2820_vm0 = vcmask 228352  }
  0x80   :  { %v58_v50 = vpop.permute.xlu0 %57 }
  0x81   :  { %v63_v54 = vsel %vm62_vm1, %v61_v49, %v58_v50  ;;  %v4005_v49 = vld [vmem:[#allocation2 + $0x13c] sm:$0xf]  ;;  %v3015_v50 = vld [vmem:[#allocation2 + $0x144] sm:$0xf0] }
  0x82   :  { %v4414_v57 = vpack.c.bf16 %v63_v54, %v63_v54  ;;  %v3018_v53 = vor.u32 %v4005_v49, %v3015_v50  ;;  %v2874_v54 = vor.u32 %v3969_v51, %v2871_v52  ;;  %v4001_v49 = vld [vmem:[#allocation2 + $0x118] sm:$0xf0]  ;;  %v4020_v51 = vld [vmem:[#allocation2 + $0x1b4] sm:$0xf]  ;;  %v3075_v52 = vld [vmem:[#allocation2 + $0x1bc] sm:$0xf0] }
  0x83   :  { %v2998_v50 = vor.u32 %v4001_v49, %v2997_v47  ;;  %v4060_v49 = vld [vmem:[#allocation2 + $0x2f0] sm:$0xf0] }
  0x84   :  { %2852 = vmatmul.msk.bf16.vlgmr.msra.gmra.mxu2 %vm113_vm2, %v4414_v57  ;;  %2853 = vmatmul.msk.bf16.vlgmr.msra.gmra.mxu1 %vm113_vm2, %v4414_v57 }
  0x85   :  { %684 = vmatpush.bf16.msra.mxu2 %v2946_v55  ;;  %v4002_v55 = vld [vmem:[#allocation2 + $0x124] sm:$0xf]  ;;  %699 = vmatpush.bf16.msrb.mxu3 %v3018_v53  ;;  %v2937_v53 = vld [vmem:[#allocation2 + $0x98] sm:$0xf] }
  0x86   :  { %v3006_v61 = vor.u32 %v4002_v55, %v3003_v56  ;;  %v3986_v55 = vld [vmem:[#allocation2 + $0xa0] sm:$0xf0]  ;;  %v2985_v56 = vld [vmem:[#allocation2 + $0xf8] sm:$0xf] }
  0x87   :  { %v2938_v59 = vor.u32 %v3986_v55, %v2937_v53  ;;  %v4031_v53 = vld [vmem:[#allocation2 + $0x208] sm:$0xf0]  ;;  %v4057_v55 = vld [vmem:[#allocation2 + $0x2d8] sm:$0xf0] }
  0x89   :  { %685 = vmatpush.bf16.msra.mxu2 %v2934_v5  ;;  %700 = vmatpush.bf16.msrb.mxu3 %v3006_v61  ;;  %v4032_v5 = vld [vmem:[#allocation2 + $0x214] sm:$0xf]  ;;  %v3063_v61 = vld [vmem:[#allocation2 + $0x1a4] sm:$0xf0] }
  0x8a   :  { %v3126_v8 = vor.u32 %v4032_v5, %v3123_v6  ;;  %v4425_v5 = vld [vmem:[%s5085_s7] sm:$0x11] }
  0x8b   :  { %v4014_v6 = vld [vmem:[#allocation2 + $0x184] sm:$0xf]  ;;  %v76_v13 = vunpack.c.h.bf16 %v4425_v5 }
  0x8c   :  { %711 = vmatpush.bf16.msrb.mxu0 %v3126_v8  ;;  %v2913_v8 = vld [vmem:[#allocation2 + $0x68] sm:$0xf] }
  0x8d   :  { %686 = vmatpush.bf16.msra.mxu2 %v2922_v18  ;;  %701 = vmatpush.bf16.msrb.mxu3 %v2994_v7  ;;  %v3111_v18 = vld [vmem:[#allocation2 + $0x204] sm:$0xf0]  ;;  %v3051_v7 = vld [vmem:[#allocation2 + $0x18c] sm:$0xf0]  ;;  %v2914_v14 = vor.u32 %v3980_v10, %v2913_v8  ;;  %v4084_v10 = vld [vmem:[#allocation2 + $0x3b0] sm:$0xf0] }
  0x8e   :  { %v3114_v20 = vor.u32 %v4029_v17, %v3111_v18  ;;  %v3054_v9 = vor.u32 %v4014_v6, %v3051_v7  ;;  %v3977_v17 = vld [vmem:[#allocation2 + $0x58] sm:$0xf0]  ;;  %v79_v18 = vperm.slane %v76_v13, 0  ;;  %v3193_v6 = vld [vmem:[#allocation2 + $0x2a0] sm:$0xf] }
  0x8f   :  { %v4051_v7 = vld [vmem:[#allocation2 + $0x2a8] sm:$0xf0] }
  0x90   :  { %712 = vmatpush.bf16.msrb.mxu0 %v3114_v20  ;;  %v75_v20 = vunpack.c.l.bf16 %v4425_v5 }
  0x91   :  { %687 = vmatpush.bf16.msra.mxu2 %v2910_v28  ;;  %702 = vmatpush.bf16.msrb.mxu3 %v2982_v19  ;;  %v2967_v28 = vld [vmem:[#allocation2 + $0xe4] sm:$0xf0]  ;;  %v2902_v19 = vor.u32 %v3977_v17, %v2901_v16  ;;  %v4022_v16 = vld [vmem:[#allocation2 + $0x1c0] sm:$0xf0] }
  0x92   :  { %v2970_v31 = vor.u32 %v3993_v26, %v2967_v28  ;;  %v78_v27 = vperm.slane %v75_v20, 0  ;;  %v2877_v28 = vld [vmem:[#allocation2 + $0x20] sm:$0xf]  ;;  %v3181_v17 = vld [vmem:[#allocation2 + $0x288] sm:$0xf] }
  0x93   :  { %v2878_v30 = vor.u32 %v3971_v29, %v2877_v28  ;;  %v3169_v28 = vld [vmem:[#allocation2 + $0x270] sm:$0xf]  ;;  %v4045_v29 = vld [vmem:[#allocation2 + $0x278] sm:$0xf0] }
  0x94   :  { %2854 = vmatmul.msk.bf16.vlgmr.msrb.gmra.mxu2 %vm113_vm2, %v4414_v57  ;;  %v4013_v57 = vld [vmem:[#allocation2 + $0x178] sm:$0xf0]  ;;  %713 = vmatpush.bf16.msrb.mxu0 %v3102_v32 }
  0x95   :  { %688 = vmatpush.bf16.msra.mxu2 %v2898_v40  ;;  %v3046_v63 = vor.u32 %v4013_v57, %v3045_v60  ;;  %703 = vmatpush.bf16.msrb.mxu3 %v2970_v31  ;;  %v2955_v40 = vld [vmem:[#allocation2 + $0xcc] sm:$0xf0]  ;;  %v2986_v60 = vor.u32 %v3998_v58, %v2985_v56  ;;  %v4017_v57 = vld [vmem:[#allocation2 + $0x19c] sm:$0xf] }
  0x96   :  { %v2958_v43 = vor.u32 %v3990_v38, %v2955_v40 }
  0x98   :  { %714 = vmatpush.bf16.msrb.mxu0 %v3090_v44  ;;  %v4034_v44 = vld [vmem:[#allocation2 + $0x220] sm:$0xf0] }
  0x99   :  { %689 = vmatpush.bf16.msra.mxu2 %v2886_v48  ;;  %v2950_v48 = vor.u32 %v3989_v46, %v2949_v45  ;;  %704 = vmatpush.bf16.msrb.mxu3 %v2958_v43  ;;  %v3129_v43 = vld [vmem:[#allocation2 + $0x218] sm:$0xf]  ;;  %v4441_v45 = vld [vmem:[%s5085_s7 + $0x8] sm:$0x1] }
  0x9a   :  { %v3130_v47 = vor.u32 %v4034_v44, %v3129_v43  ;;  %v4056_v43 = vld [vmem:[#allocation2 + $0x2d4] sm:$0xf]  ;;  %v3219_v44 = vld [vmem:[#allocation2 + $0x2dc] sm:$0xf0] }
  0x9b   :  { %723 = vmatpush.bf16.msra.mxu1 %v2950_v48  ;;  %v3229_v48 = vld [vmem:[#allocation2 + $0x2e8] sm:$0xf] }
  0x9d   :  { %690 = vmatpush.bf16.msra.mxu2 %v2874_v54  ;;  %v3078_v54 = vor.u32 %v4020_v51, %v3075_v52  ;;  %v77_v51 = vunpack.c.l.bf16 %v4441_v45  ;;  %v3117_v52 = vld [vmem:[#allocation2 + $0x200] sm:$0xf]  ;;  %v3493_v45 = vld [vmem:[#allocation2 + $0x4f8] sm:$0xf] }
  0x9e   :  { %v3118_v58 = vor.u32 %v4031_v53, %v3117_v52  ;;  %v3195_v52 = vld [vmem:[#allocation2 + $0x2ac] sm:$0xf0] }
  0x9f   :  { %715 = vmatpush.bf16.msrb.mxu0 %v3078_v54  ;;  %724 = vmatpush.bf16.msra.mxu1 %v2938_v59  ;;  %v3230_v54 = vor.u32 %v4060_v49, %v3229_v48  ;;  %v3205_v59 = vld [vmem:[#allocation2 + $0x2b8] sm:$0xf]  ;;  %v3207_v48 = vld [vmem:[#allocation2 + $0x2c4] sm:$0xf0] }
  0xa1   :  { %691 = vmatpush.bf16.msra.mxu2 %v2862_v62  ;;  %v2925_v62 = vld [vmem:[#allocation2 + $0x80] sm:$0xf] }
  0xa2   :  { %v2926_v3 = vor.u32 %v3983_v0, %v2925_v62  ;;  %v4028_v62 = vld [vmem:[#allocation2 + $0x1f0] sm:$0xf0] }
  0xa4   :  { %725 = vmatpush.bf16.msra.mxu1 %v2926_v3  ;;  %v3093_v3 = vld [vmem:[#allocation2 + $0x1d0] sm:$0xf] }
  0xa5   :  { %736 = vmatpush.bf16.msrb.mxu2 %v3046_v63  ;;  %v3066_v63 = vor.u32 %v4017_v57, %v3063_v61  ;;  %v80_v57 = vperm.slane %v77_v51, 0  ;;  %v3105_v61 = vld [vmem:[#allocation2 + $0x1e8] sm:$0xf] }
  0xa6   :  { %v3106_v1 = vor.u32 %v4028_v62, %v3105_v61  ;;  %v3183_v61 = vld [vmem:[#allocation2 + $0x294] sm:$0xf0]  ;;  %v4083_v62 = vld [vmem:[#allocation2 + $0x3ac] sm:$0xf] }
  0xa7   :  { %716 = vmatpush.bf16.msrb.mxu0 %v3066_v63 }
  0xa8   :  { %726 = vmatpush.bf16.msra.mxu1 %v2914_v14  ;;  %v3081_v14 = vld [vmem:[#allocation2 + $0x1b8] sm:$0xf] }
  0xa9   :  { %737 = vmatpush.bf16.msrb.mxu2 %v3034_v11  ;;  %v2961_v11 = vld [vmem:[#allocation2 + $0xc8] sm:$0xf] }
  0xaa   :  { %v2962_v15 = vor.u32 %v3992_v12, %v2961_v11 }
  0xab   :  { %717 = vmatpush.bf16.msrb.mxu0 %v3054_v9  ;;  %v3325_v9 = vld [vmem:[#allocation2 + $0x3a8] sm:$0xf] }
  0xac   :  { %727 = vmatpush.bf16.msra.mxu1 %v2902_v19  ;;  %v3326_v19 = vor.u32 %v4084_v10, %v3325_v9 }
  0xad   :  { %738 = vmatpush.bf16.msrb.mxu2 %v3022_v23 }
  0xb0   :  { %728 = vmatpush.bf16.msra.mxu1 %v2890_v24  ;;  %v3082_v24 = vor.u32 %v4022_v16, %v3081_v14  ;;  %v4072_v16 = vld [vmem:[#allocation2 + $0x350] sm:$0xf0] }
  0xb1   :  { %739 = vmatpush.bf16.msrb.mxu2 %v3010_v35  ;;  %v4037_v35 = vld [vmem:[#allocation2 + $0x238] sm:$0xf0] }
  0xb2   :  { %v3142_v41 = vor.u32 %v4037_v35, %v3141_v33  ;;  %v3057_v33 = vld [vmem:[#allocation2 + $0x188] sm:$0xf]  ;;  %v4016_v35 = vld [vmem:[#allocation2 + $0x190] sm:$0xf0] }
  0xb4   :  { %729 = vmatpush.bf16.msra.mxu1 %v2878_v30  ;;  %v3314_v30 = vor.u32 %v4081_v22, %v3313_v21  ;;  %v4077_v21 = vld [vmem:[#allocation2 + $0x37c] sm:$0xf]  ;;  %v3303_v22 = vld [vmem:[#allocation2 + $0x384] sm:$0xf0] }
  0xb5   :  { %740 = vmatpush.bf16.msrb.mxu2 %v2998_v50  ;;  %v3217_v50 = vld [vmem:[#allocation2 + $0x2d0] sm:$0xf] }
  0xb6   :  { %v3218_v56 = vor.u32 %v4057_v55, %v3217_v50  ;;  %v4050_v50 = vld [vmem:[#allocation2 + $0x2a4] sm:$0xf]  ;;  %v4039_v55 = vld [vmem:[#allocation2 + $0x248] sm:$0xf0] }
  0xb7   :  { %v3198_v53 = vor.u32 %v4050_v50, %v3195_v52  ;;  %v3321_v52 = vld [vmem:[#allocation2 + $0x398] sm:$0xf] }
  0xb8   :  { %730 = vmatpush.bf16.msra.mxu1 %v2866_v39  ;;  %v3058_v39 = vor.u32 %v4016_v35, %v3057_v33  ;;  %v3147_v33 = vld [vmem:[#allocation2 + $0x24c] sm:$0xf0] }
  0xb9   :  { %741 = vmatpush.bf16.msrb.mxu2 %v2986_v60  ;;  %v4054_v60 = vld [vmem:[#allocation2 + $0x2c0] sm:$0xf0] }
  0xba   :  { %v3206_v63 = vor.u32 %v4054_v60, %v3205_v59  ;;  %v4078_v59 = vld [vmem:[#allocation2 + $0x380] sm:$0xf0]  ;;  %v4047_v60 = vld [vmem:[#allocation2 + $0x28c] sm:$0xf] }
  0xbd   :  { %742 = vmatpush.bf16.msrb.mxu2 %v2974_v4  ;;  %v4025_v4 = vld [vmem:[#allocation2 + $0x1d8] sm:$0xf0] }
  0xbe   :  { %v3094_v12 = vor.u32 %v4025_v4, %v3093_v3  ;;  %v4044_v3 = vld [vmem:[#allocation2 + $0x274] sm:$0xf] }
  0xc1   :  { %743 = vmatpush.bf16.msrb.mxu2 %v2962_v15  ;;  %v3194_v15 = vor.u32 %v4051_v7, %v3193_v6  ;;  %v3171_v6 = vld [vmem:[#allocation2 + $0x27c] sm:$0xf0]  ;;  %v4080_v7 = vld [vmem:[#allocation2 + $0x394] sm:$0xf] }
  0xc2   :  { %v3174_v9 = vor.u32 %v4044_v3, %v3171_v6  ;;  %v4079_v3 = vld [vmem:[#allocation2 + $0x388] sm:$0xf0] }
 0x101   :  { %v139_v23 = vpop.f32.mrf.mxu1 }
 0x102   :  { %v140_v25 = vadd.f32 %v139_v23, %v79_v18  ;;  %v4048_v18 = vld [vmem:[#allocation2 + $0x290] sm:$0xf0] }
 0x104   :  { %v157_v26 = vmax.f32 %v140_v25, 0.0  ;;  %v3069_v25 = vld [vmem:[#allocation2 + $0x1a0] sm:$0xf] }
 0x106   :  { %v4433_v31 = vpack.c.bf16 %v157_v26, %v157_v26  ;;  %v3182_v26 = vor.u32 %v4048_v18, %v3181_v17  ;;  %v4041_v17 = vld [vmem:[#allocation2 + $0x25c] sm:$0xf] }
 0x107   :  { %v126_v32 = vpop.f32.mrf.mxu2 }
 0x108   :  { %v127_v34 = vadd.f32 %v126_v32, %v78_v27  ;;  %666 = vmatmul.bf16.vlgmr.msra.gmra.mxu0 %v4433_v31  ;;  %v4019_v27 = vld [vmem:[#allocation2 + $0x1a8] sm:$0xf0] }
 0x109   :  { %v141_v38 = vpop.f32.mrf.mxu1  ;;  %1257 = vmatpush.bf16.msra.mxu0 %v3230_v54  ;;  %v3070_v32 = vor.u32 %v4019_v27, %v3069_v25  ;;  %v3145_v54 = vld [vmem:[#allocation2 + $0x240] sm:$0xf]  ;;  %v3409_v25 = vld [vmem:[#allocation2 + $0x450] sm:$0xf] }
 0x10a   :  { %v156_v40 = vmax.f32 %v127_v34, 0.0  ;;  %v3170_v34 = vor.u32 %v4045_v29, %v3169_v28  ;;  %v3231_v38 = vld [vmem:[#allocation2 + $0x2f4] sm:$0xf0]  ;;  %v3265_v28 = vld [vmem:[#allocation2 + $0x330] sm:$0xf] }
 0x10b   :  { %v4069_v29 = vld [vmem:[#allocation2 + $0x338] sm:$0xf0] }
 0x10c   :  { %v4436_v42 = vpack.c.bf16 %v156_v40, %v156_v40  ;;  %v3158_v40 = vor.u32 %v4042_v37, %v3157_v36  ;;  %v3291_v36 = vld [vmem:[#allocation2 + $0x36c] sm:$0xf0] }
 0x10d   :  { %1258 = vmatpush.bf16.msra.mxu0 %v3218_v56  ;;  %v3146_v56 = vor.u32 %v4039_v55, %v3145_v54  ;;  %v3333_v37 = vld [vmem:[#allocation2 + $0x3b0] sm:$0xf]  ;;  %v3385_v54 = vld [vmem:[#allocation2 + $0x420] sm:$0xf] }
 0x10e   :  { %653 = vmatmul.bf16.vlgmr.msra.gmra.mxu3 %v4436_v42  ;;  %692 = vmatmul.bf16.vlgmr.msra.gmra.mxu2 %v4436_v42 }
 0x10f   :  { %v128_v46 = vpop.f32.mrf.mxu2  ;;  %749 = vmatpush.bf16.msra.mxu3 %v3142_v41 }
 0x110   :  { %v3222_v46 = vor.u32 %v4056_v43, %v3219_v44  ;;  %v3253_v43 = vld [vmem:[#allocation2 + $0x318] sm:$0xf] }
 0x111   :  { %1259 = vmatpush.bf16.msra.mxu0 %v3206_v63  ;;  %v3186_v63 = vor.u32 %v4047_v60, %v3183_v61  ;;  %v4063_v60 = vld [vmem:[#allocation2 + $0x308] sm:$0xf0] }
 0x113   :  { %750 = vmatpush.bf16.msra.mxu3 %v3130_v47  ;;  %v4053_v47 = vld [vmem:[#allocation2 + $0x2bc] sm:$0xf] }
 0x114   :  { %v3210_v49 = vor.u32 %v4053_v47, %v3207_v48  ;;  %v4071_v47 = vld [vmem:[#allocation2 + $0x34c] sm:$0xf]  ;;  %v3279_v48 = vld [vmem:[#allocation2 + $0x354] sm:$0xf0] }
 0x115   :  { %1260 = vmatpush.bf16.msra.mxu0 %v3194_v15  ;;  %v3277_v15 = vld [vmem:[#allocation2 + $0x348] sm:$0xf]  ;;  %v3282_v50 = vor.u32 %v4071_v47, %v3279_v48  ;;  %v4061_v48 = vld [vmem:[#allocation2 + $0x2f8] sm:$0xf0] }
 0x116   :  { %v3278_v18 = vor.u32 %v4072_v16, %v3277_v15  ;;  %v3297_v15 = vld [vmem:[#allocation2 + $0x368] sm:$0xf] }
 0x117   :  { %v152_v0 = vpop.f32.mrf.mxu2  ;;  %751 = vmatpush.bf16.msra.mxu3 %v3118_v58  ;;  %v3301_v58 = vld [vmem:[#allocation2 + $0x378] sm:$0xf] }
 0x118   :  { %v153_v2 = vadd.f32 %v152_v0, %v80_v57  ;;  %v3302_v57 = vor.u32 %v4078_v59, %v3301_v58  ;;  %v3241_v59 = vld [vmem:[#allocation2 + $0x300] sm:$0xf] }
 0x119   :  { %1261 = vmatpush.bf16.msra.mxu0 %v3182_v26  ;;  %v4105_v26 = vld [vmem:[#allocation2 + $0x458] sm:$0xf0]  ;;  %v3242_v61 = vor.u32 %v4063_v60, %v3241_v59  ;;  %v4058_v59 = vld [vmem:[#allocation2 + $0x2e0] sm:$0xf0] }
 0x11a   :  { %v158_v8 = vmax.f32 %v153_v2, 0.0  ;;  %v4075_v2 = vld [vmem:[#allocation2 + $0x368] sm:$0xf0]  ;;  %v3410_v27 = vor.u32 %v4105_v26, %v3409_v25  ;;  %v4101_v26 = vld [vmem:[#allocation2 + $0x43c] sm:$0xf] }
 0x11b   :  { %752 = vmatpush.bf16.msra.mxu3 %v3106_v1  ;;  %v3289_v1 = vld [vmem:[#allocation2 + $0x360] sm:$0xf] }
 0x11c   :  { %v161_v11 = vpack.c.bf16 %v158_v8, %v158_v8  ;;  %v3290_v4 = vor.u32 %v4075_v2, %v3289_v1  ;;  %v3315_v8 = vld [vmem:[#allocation2 + $0x39c] sm:$0xf0] }
 0x11d   :  { %1262 = vmatpush.bf16.msra.mxu0 %v3170_v34  ;;  %v3318_v10 = vor.u32 %v4080_v7, %v3315_v8  ;;  %v4074_v34 = vld [vmem:[#allocation2 + $0x364] sm:$0xf]  ;;  %v3309_v2 = vld [vmem:[#allocation2 + $0x380] sm:$0xf]  ;;  %v4096_v7 = vld [vmem:[#allocation2 + $0x410] sm:$0xf0] }
 0x11e   :  { %679 = vmatmul.bf16.vlgmr.msrb.gmra.mxu1 %v161_v11  ;;  %705 = vmatmul.bf16.vlgmr.msrb.gmra.mxu3 %v4433_v31  ;;  %v3310_v6 = vor.u32 %v4079_v3, %v3309_v2  ;;  %v3213_v2 = vld [vmem:[#allocation2 + $0x2c0] sm:$0xf]  ;;  %v4055_v3 = vld [vmem:[#allocation2 + $0x2c8] sm:$0xf0] }
 0x11f   :  { %718 = vmatmul.bf16.vlgmr.msrb.gmra.mxu0 %v161_v11  ;;  %744 = vmatmul.bf16.vlgmr.msrb.gmra.mxu2 %v4433_v31  ;;  %v154_v23 = vpop.f32.mrf.mxu2  ;;  %v4059_v31 = vld [vmem:[#allocation2 + $0x2ec] sm:$0xf] }
 0x120   :  { %753 = vmatpush.bf16.msra.mxu3 %v3094_v12  ;;  %1270 = vmatpush.bf16.msrb.mxu1 %v3326_v19  ;;  %v3234_v41 = vor.u32 %v4059_v31, %v3231_v38  ;;  %v4108_v12 = vld [vmem:[#allocation2 + $0x470] sm:$0xf0]  ;;  %v3159_v19 = vld [vmem:[#allocation2 + $0x264] sm:$0xf0]  ;;  %v4085_v31 = vld [vmem:[#allocation2 + $0x3b8] sm:$0xf0]  ;;  %v3294_v38 = vor.u32 %v4074_v34, %v3291_v36 }
 0x121   :  { %1263 = vmatpush.bf16.msra.mxu0 %v3158_v40  ;;  %v3162_v23 = vor.u32 %v4041_v17, %v3159_v19  ;;  %v3397_v40 = vld [vmem:[#allocation2 + $0x438] sm:$0xf]  ;;  %v4076_v17 = vld [vmem:[#allocation2 + $0x370] sm:$0xf0]  ;;  %v4093_v19 = vld [vmem:[#allocation2 + $0x3f8] sm:$0xf0] }
 0x122   :  { %v4090_v34 = vld [vmem:[#allocation2 + $0x3e0] sm:$0xf0] }
 0x124   :  { %754 = vmatpush.bf16.msra.mxu3 %v3082_v24  ;;  %1271 = vmatpush.bf16.msrb.mxu1 %v3314_v30  ;;  %v3306_v24 = vor.u32 %v4077_v21, %v3303_v22  ;;  %v4038_v30 = vld [vmem:[#allocation2 + $0x244] sm:$0xf]  ;;  %v3298_v21 = vor.u32 %v4076_v17, %v3297_v15  ;;  %v3339_v17 = vld [vmem:[#allocation2 + $0x3cc] sm:$0xf0] }
 0x125   :  { %1264 = vmatpush.bf16.msra.mxu0 %v3146_v56  ;;  %v3150_v35 = vor.u32 %v4038_v30, %v3147_v33  ;;  %v4099_v56 = vld [vmem:[#allocation2 + $0x428] sm:$0xf0]  ;;  %v4073_v30 = vld [vmem:[#allocation2 + $0x358] sm:$0xf0]  ;;  %v3349_v33 = vld [vmem:[#allocation2 + $0x3d8] sm:$0xf] }
 0x126   :  { %v3386_v58 = vor.u32 %v4099_v56, %v3385_v54 }
 0x128   :  { %755 = vmatpush.bf16.msra.mxu3 %v3070_v32  ;;  %1272 = vmatpush.bf16.msrb.mxu1 %v3302_v57  ;;  %v3266_v32 = vor.u32 %v4069_v29, %v3265_v28  ;;  %v4068_v57 = vld [vmem:[#allocation2 + $0x334] sm:$0xf]  ;;  %v3285_v28 = vld [vmem:[#allocation2 + $0x350] sm:$0xf] }
 0x12c   :  { %756 = vmatpush.bf16.msra.mxu3 %v3058_v39  ;;  %1273 = vmatpush.bf16.msrb.mxu1 %v3290_v4  ;;  %v3334_v39 = vor.u32 %v4085_v31, %v3333_v37  ;;  %v3373_v4 = vld [vmem:[#allocation2 + $0x408] sm:$0xf]  ;;  %v4098_v37 = vld [vmem:[#allocation2 + $0x424] sm:$0xf]  ;;  %v3387_v31 = vld [vmem:[#allocation2 + $0x42c] sm:$0xf0] }
 0x12d   :  { %v3374_v8 = vor.u32 %v4096_v7, %v3373_v4  ;;  %v3214_v4 = vor.u32 %v4055_v3, %v3213_v2 }
 0x12e   :  { %731 = vmatmul.bf16.vlgmr.msra.gmra.mxu1 %v4436_v42  ;;  %v3327_v42 = vld [vmem:[#allocation2 + $0x3b4] sm:$0xf0] }
 0x12f   :  { %757 = vmatmul.bf16.vlgmr.msra.gmra.mxu3 %v161_v11  ;;  %v3330_v0 = vor.u32 %v4083_v62, %v3327_v42  ;;  %v3421_v11 = vld [vmem:[#allocation2 + $0x468] sm:$0xf]  ;;  %v3267_v62 = vld [vmem:[#allocation2 + $0x33c] sm:$0xf0]  ;;  %v4107_v42 = vld [vmem:[#allocation2 + $0x46c] sm:$0xf] }
 0x130   :  { %1296 = vmatpush.bf16.msrb.mxu3 %v3234_v41  ;;  %v3422_v14 = vor.u32 %v4108_v12, %v3421_v11  ;;  %1274 = vmatpush.bf16.msrb.mxu1 %v3278_v18  ;;  %v4102_v41 = vld [vmem:[#allocation2 + $0x440] sm:$0xf0]  ;;  %v4104_v12 = vld [vmem:[#allocation2 + $0x454] sm:$0xf]  ;;  %v3361_v18 = vld [vmem:[#allocation2 + $0x3f0] sm:$0xf] }
 0x131   :  { %1309 = vmatpush.bf16.msrb.mxu0 %v3330_v0  ;;  %v3398_v44 = vor.u32 %v4102_v41, %v3397_v40  ;;  %v3270_v0 = vor.u32 %v4068_v57, %v3267_v62  ;;  %v3362_v22 = vor.u32 %v4093_v19, %v3361_v18  ;;  %v4070_v40 = vld [vmem:[#allocation2 + $0x340] sm:$0xf0]  ;;  %v4092_v57 = vld [vmem:[#allocation2 + $0x3f4] sm:$0xf]  ;;  %v3249_v62 = vld [vmem:[#allocation2 + $0x308] sm:$0xf] }
 0x132   :  { %1283 = vmatpush.bf16.msra.mxu2 %v3422_v14  ;;  %v3411_v14 = vld [vmem:[#allocation2 + $0x45c] sm:$0xf0] }
 0x133   :  { %v3414_v16 = vor.u32 %v4104_v12, %v3411_v14  ;;  %v3201_v12 = vld [vmem:[#allocation2 + $0x2a8] sm:$0xf]  ;;  %v4052_v14 = vld [vmem:[#allocation2 + $0x2b0] sm:$0xf0] }
 0x134   :  { %1297 = vmatpush.bf16.msrb.mxu3 %v3222_v46  ;;  %1275 = vmatpush.bf16.msrb.mxu1 %v3266_v32  ;;  %v4066_v46 = vld [vmem:[#allocation2 + $0x320] sm:$0xf0]  ;;  %v3286_v32 = vor.u32 %v4073_v30, %v3285_v28  ;;  %v3202_v15 = vor.u32 %v4052_v14, %v3201_v12  ;;  %v3369_v14 = vld [vmem:[#allocation2 + $0x3f8] sm:$0xf] }
 0x135   :  { %1310 = vmatpush.bf16.msrb.mxu0 %v3318_v10  ;;  %v3255_v10 = vld [vmem:[#allocation2 + $0x324] sm:$0xf0]  ;;  %v4046_v28 = vld [vmem:[#allocation2 + $0x280] sm:$0xf0] }
 0x136   :  { %1284 = vmatpush.bf16.msra.mxu2 %v3410_v27  ;;  %v3399_v27 = vld [vmem:[#allocation2 + $0x444] sm:$0xf0] }
 0x137   :  { %v3402_v29 = vor.u32 %v4101_v26, %v3399_v27  ;;  %v3177_v27 = vld [vmem:[#allocation2 + $0x278] sm:$0xf] }
 0x138   :  { %1298 = vmatpush.bf16.msrb.mxu3 %v3210_v49  ;;  %v3254_v49 = vor.u32 %v4066_v46, %v3253_v43  ;;  %v3337_v43 = vld [vmem:[#allocation2 + $0x3c0] sm:$0xf]  ;;  %v3237_v46 = vld [vmem:[#allocation2 + $0x2f0] sm:$0xf] }
 0x139   :  { %1311 = vmatpush.bf16.msrb.mxu0 %v3306_v24  ;;  %v3243_v24 = vld [vmem:[#allocation2 + $0x30c] sm:$0xf0] }
 0x13a   :  { %1285 = vmatpush.bf16.msra.mxu2 %v3398_v44  ;;  %1276 = vmatpush.bf16.msrb.mxu1 %v3254_v49  ;;  %v4087_v44 = vld [vmem:[#allocation2 + $0x3c8] sm:$0xf0]  ;;  %v3238_v49 = vor.u32 %v4061_v48, %v3237_v46  ;;  %v4040_v48 = vld [vmem:[#allocation2 + $0x250] sm:$0xf0] }
 0x13b   :  { %v3338_v47 = vor.u32 %v4087_v44, %v3337_v43  ;;  %v4106_v43 = vld [vmem:[#allocation2 + $0x460] sm:$0xf0] }
 0x13c   :  { %1299 = vmatpush.bf16.msrb.mxu3 %v3198_v53  ;;  %v4082_v53 = vld [vmem:[#allocation2 + $0x3a0] sm:$0xf0] }
 0x13d   :  { %1312 = vmatpush.bf16.msrb.mxu0 %v3294_v38  ;;  %v3322_v55 = vor.u32 %v4082_v53, %v3321_v52  ;;  %v3273_v38 = vld [vmem:[#allocation2 + $0x338] sm:$0xf]  ;;  %v3261_v53 = vld [vmem:[#allocation2 + $0x320] sm:$0xf] }
 0x13e   :  { %1286 = vmatpush.bf16.msra.mxu2 %v3386_v58  ;;  %1277 = vmatpush.bf16.msrb.mxu1 %v3242_v61  ;;  %v3274_v41 = vor.u32 %v4070_v40, %v3273_v38  ;;  %v3375_v52 = vld [vmem:[#allocation2 + $0x414] sm:$0xf0]  ;;  %v3363_v61 = vld [vmem:[#allocation2 + $0x3fc] sm:$0xf0] }
 0x13f   :  { %v3225_v58 = vld [vmem:[#allocation2 + $0x2d8] sm:$0xf]  ;;  %v3165_v38 = vld [vmem:[#allocation2 + $0x260] sm:$0xf] }
 0x140   :  { %1300 = vmatpush.bf16.msrb.mxu3 %v3186_v63  ;;  %v3423_v63 = vld [vmem:[#allocation2 + $0x474] sm:$0xf0]  ;;  %v3226_v60 = vor.u32 %v4058_v59, %v3225_v58 }
 0x141   :  { %1313 = vmatpush.bf16.msrb.mxu0 %v3282_v50  ;;  %v3426_v1 = vor.u32 %v4107_v42, %v3423_v63  ;;  %v4095_v50 = vld [vmem:[#allocation2 + $0x40c] sm:$0xf]  ;;  %v3366_v63 = vor.u32 %v4092_v57, %v3363_v61  ;;  %v260_v57 = vperm.slane %v77_v51, 1  ;;  %v3393_v61 = vld [vmem:[#allocation2 + $0x428] sm:$0xf] }
 0x142   :  { %1287 = vmatpush.bf16.msra.mxu2 %v3374_v8  ;;  %v3378_v54 = vor.u32 %v4095_v50, %v3375_v52  ;;  %v4089_v8 = vld [vmem:[#allocation2 + $0x3dc] sm:$0xf]  ;;  %v4126_v51 = vld [vmem:[#allocation2 + $0x500] sm:$0xf0] }
 0x143   :  { %1322 = vmatpush.bf16.msra.mxu1 %v3426_v1 }
 0x144   :  { %1301 = vmatpush.bf16.msrb.mxu3 %v3174_v9  ;;  %v4065_v9 = vld [vmem:[#allocation2 + $0x31c] sm:$0xf] }
 0x145   :  { %1314 = vmatpush.bf16.msrb.mxu0 %v3270_v0  ;;  %v3258_v11 = vor.u32 %v4065_v9, %v3255_v10  ;;  %v4064_v0 = vld [vmem:[#allocation2 + $0x310] sm:$0xf0]  ;;  %v3351_v9 = vld [vmem:[#allocation2 + $0x3e4] sm:$0xf0]  ;;  %v258_v10 = vperm.slane %v75_v20, 1 }
 0x146   :  { %1288 = vmatpush.bf16.msra.mxu2 %v3362_v22  ;;  %v3250_v1 = vor.u32 %v4064_v0, %v3249_v62  ;;  %v4049_v22 = vld [vmem:[#allocation2 + $0x298] sm:$0xf0]  ;;  %v4100_v62 = vld [vmem:[#allocation2 + $0x430] sm:$0xf0] }
 0x147   :  { %1323 = vmatpush.bf16.msra.mxu1 %v3414_v16  ;;  %v4086_v16 = vld [vmem:[#allocation2 + $0x3c4] sm:$0xf]  ;;  %v4132_v0 = vld [vmem:[#allocation2 + $0x530] sm:$0xf0] }
 0x148   :  { %1302 = vmatpush.bf16.msrb.mxu3 %v3162_v23  ;;  %v4062_v23 = vld [vmem:[#allocation2 + $0x304] sm:$0xf]  ;;  %v3342_v19 = vor.u32 %v4086_v16, %v3339_v17  ;;  %v3494_v16 = vor.u32 %v4126_v51, %v3493_v45  ;;  %v3565_v51 = vld [vmem:[#allocation2 + $0x588] sm:$0xf] }
 0x149   :  { %1315 = vmatpush.bf16.msrb.mxu0 %v3258_v11  ;;  %v3246_v25 = vor.u32 %v4062_v23, %v3243_v24  ;;  %v3354_v11 = vor.u32 %v4089_v8, %v3351_v9  ;;  %v3381_v8 = vld [vmem:[#allocation2 + $0x410] sm:$0xf]  ;;  %v4097_v9 = vld [vmem:[#allocation2 + $0x418] sm:$0xf0] }
 0x14a   :  { %v3382_v12 = vor.u32 %v4097_v9, %v3381_v8  ;;  %v4155_v9 = vld [vmem:[#allocation2 + $0x5ec] sm:$0xf] }
 0x14b   :  { %1324 = vmatpush.bf16.msra.mxu1 %v3402_v29  ;;  %v259_v29 = vperm.slane %v76_v13, 1  ;;  %v3153_v13 = vld [vmem:[#allocation2 + $0x248] sm:$0xf] }
 0x14c   :  { %1303 = vmatpush.bf16.msrb.mxu3 %v3150_v35  ;;  %v3350_v35 = vor.u32 %v4090_v34, %v3349_v33  ;;  %v3429_v33 = vld [vmem:[#allocation2 + $0x470] sm:$0xf]  ;;  %v4109_v34 = vld [vmem:[#allocation2 + $0x478] sm:$0xf0]  ;;  %v3154_v52 = vor.u32 %v4040_v48, %v3153_v13 }
 0x14d   :  { %1316 = vmatpush.bf16.msrb.mxu0 %v3246_v25 }
 0x14e   :  { %1289 = vmatpush.bf16.msra.mxu2 %v3350_v35  ;;  %v3178_v35 = vor.u32 %v4046_v28, %v3177_v27  ;;  %v4091_v27 = vld [vmem:[#allocation2 + $0x3e8] sm:$0xf0] }
 0x150   :  { %1348 = vmatpush.bf16.msra.mxu3 %v3334_v39  ;;  %v3390_v39 = vor.u32 %v4098_v37, %v3387_v31  ;;  %v3430_v31 = vor.u32 %v4109_v34, %v3429_v33 }
 0x152   :  { %1325 = vmatpush.bf16.msra.mxu1 %v3390_v39  ;;  %1290 = vmatpush.bf16.msra.mxu2 %v3338_v47  ;;  %v4043_v39 = vld [vmem:[#allocation2 + $0x268] sm:$0xf0] }
 0x153   :  { %v3166_v44 = vor.u32 %v4043_v39, %v3165_v38  ;;  %v3345_v38 = vld [vmem:[#allocation2 + $0x3c8] sm:$0xf]  ;;  %v4088_v39 = vld [vmem:[#allocation2 + $0x3d0] sm:$0xf0] }
 0x154   :  { %1349 = vmatpush.bf16.msra.mxu3 %v3322_v55  ;;  %v4067_v55 = vld [vmem:[#allocation2 + $0x328] sm:$0xf0]  ;;  %v3346_v13 = vor.u32 %v4088_v39, %v3345_v38  ;;  %v4138_v38 = vld [vmem:[#allocation2 + $0x560] sm:$0xf0]  ;;  %v3685_v39 = vld [vmem:[#allocation2 + $0x678] sm:$0xf] }
 0x155   :  { %v3262_v56 = vor.u32 %v4067_v55, %v3261_v53  ;;  %v3405_v55 = vld [vmem:[#allocation2 + $0x440] sm:$0xf] }
 0x156   :  { %1335 = vmatpush.bf16.msrb.mxu2 %v3238_v49  ;;  %1326 = vmatpush.bf16.msra.mxu1 %v3378_v54 }
 0x158   :  { %1350 = vmatpush.bf16.msra.mxu3 %v3310_v6 }
 0x15a   :  { %1336 = vmatpush.bf16.msrb.mxu2 %v3226_v60  ;;  %1327 = vmatpush.bf16.msra.mxu1 %v3366_v63  ;;  %v3517_v63 = vld [vmem:[#allocation2 + $0x528] sm:$0xf] }
 0x15b   :  { %v3518_v3 = vor.u32 %v4132_v0, %v3517_v63  ;;  %v3483_v63 = vld [vmem:[#allocation2 + $0x4ec] sm:$0xf0] }
 0x15c   :  { %1351 = vmatpush.bf16.msra.mxu3 %v3298_v21  ;;  %v3189_v21 = vld [vmem:[#allocation2 + $0x290] sm:$0xf] }
 0x15d   :  { %v3190_v23 = vor.u32 %v4049_v22, %v3189_v21 }
 0x15e   :  { %1337 = vmatpush.bf16.msrb.mxu2 %v3214_v4  ;;  %1328 = vmatpush.bf16.msra.mxu1 %v3354_v11  ;;  %v4129_v4 = vld [vmem:[#allocation2 + $0x518] sm:$0xf0] }
 0x160   :  { %1352 = vmatpush.bf16.msra.mxu3 %v3286_v32 }
 0x162   :  { %1338 = vmatpush.bf16.msrb.mxu2 %v3202_v15  ;;  %1329 = vmatpush.bf16.msra.mxu1 %v3342_v19  ;;  %v4094_v15 = vld [vmem:[#allocation2 + $0x400] sm:$0xf0]  ;;  %v4123_v19 = vld [vmem:[#allocation2 + $0x4e8] sm:$0xf0] }
 0x164   :  { %1353 = vmatpush.bf16.msra.mxu3 %v3274_v41 }
 0x166   :  { %1339 = vmatpush.bf16.msrb.mxu2 %v3190_v23 }
 0x168   :  { %1354 = vmatpush.bf16.msra.mxu3 %v3262_v56  ;;  %v4103_v56 = vld [vmem:[#allocation2 + $0x448] sm:$0xf0] }
 0x169   :  { %v3406_v59 = vor.u32 %v4103_v56, %v3405_v55  ;;  %v3495_v55 = vld [vmem:[#allocation2 + $0x504] sm:$0xf0] }
 0x16a   :  { %1340 = vmatpush.bf16.msrb.mxu2 %v3178_v35 }
 0x16c   :  { %1355 = vmatpush.bf16.msra.mxu3 %v3250_v1  ;;  %v3505_v1 = vld [vmem:[#allocation2 + $0x510] sm:$0xf] }
 0x16e   :  { %1341 = vmatpush.bf16.msrb.mxu2 %v3166_v44  ;;  %v3457_v44 = vld [vmem:[#allocation2 + $0x4b0] sm:$0xf] }
 0x172   :  { %1342 = vmatpush.bf16.msrb.mxu2 %v3154_v52  ;;  %v3507_v52 = vld [vmem:[#allocation2 + $0x51c] sm:$0xf0] }
 0x185   :  { %v4451_v36 = vpop.f32.mrf.mxu0 }
 0x18d   :  { %v669_v42 = vpop.f32.mrf.mxu0 }
 0x191   :  { %v654_v6 = vpop.f32.mrf.mxu3  ;;  %v693_v7 = vpop.f32.mrf.mxu2 }
 0x192   :  { %v655_v18 = vadd.f32 %v654_v6, %v258_v10  ;;  %v694_v40 = vadd.f32 %v693_v7, %v259_v29  ;;  %v3394_v7 = vor.u32 %v4100_v62, %v3393_v61  ;;  %v3506_v10 = vor.u32 %v4129_v4, %v3505_v1  ;;  %v4150_v61 = vld [vmem:[#allocation2 + $0x5c0] sm:$0xf0]  ;;  %v3433_v1 = vld [vmem:[#allocation2 + $0x480] sm:$0xf] }
 0x193   :  { %v4122_v62 = vld [vmem:[#allocation2 + $0x4e4] sm:$0xf]  ;;  %v3577_v4 = vld [vmem:[#allocation2 + $0x5a0] sm:$0xf] }
 0x194   :  { %v668_v26 = vadd.f32 %v4451_v36, %v655_v18  ;;  %v3417_v36 = vld [vmem:[#allocation2 + $0x458] sm:$0xf]  ;;  %v3481_v18 = vld [vmem:[#allocation2 + $0x4e0] sm:$0xf]  ;;  %v3486_v0 = vor.u32 %v4122_v62, %v3483_v63  ;;  %v4179_v62 = vld [vmem:[#allocation2 + $0x6ac] sm:$0xf] }
 0x195   :  { %v3418_v50 = vor.u32 %v4106_v43, %v3417_v36  ;;  %v3482_v28 = vor.u32 %v4123_v19, %v3481_v18  ;;  %v3519_v43 = vld [vmem:[#allocation2 + $0x534] sm:$0xf0]  ;;  %v3459_v18 = vld [vmem:[#allocation2 + $0x4bc] sm:$0xf0] }
 0x196   :  { %v3609_v63 = vld [vmem:[#allocation2 + $0x5d8] sm:$0xf] }
 0x199   :  { %v656_v24 = vpop.f32.mrf.mxu3  ;;  %v695_v25 = vpop.f32.mrf.mxu2 }
 0x19a   :  { %v3370_v24 = vor.u32 %v4094_v15, %v3369_v14  ;;  %v3613_v25 = vld [vmem:[#allocation2 + $0x5e8] sm:$0xf] }
 0x19b   :  { %v680_v20 = vpop.f32.mrf.mxu1  ;;  %v3709_v14 = vld [vmem:[#allocation2 + $0x6a8] sm:$0xf] }
 0x19c   :  { %v681_v30 = vadd.f32 %v680_v20, %v668_v26  ;;  %v719_v32 = vpop.f32.mrf.mxu0  ;;  %v4156_v26 = vld [vmem:[#allocation2 + $0x5f0] sm:$0xf0]  ;;  %v3357_v20 = vld [vmem:[#allocation2 + $0x3e0] sm:$0xf] }
 0x19d   :  { %v3614_v33 = vor.u32 %v4156_v26, %v3613_v25  ;;  %v3358_v35 = vor.u32 %v4091_v27, %v3357_v20  ;;  %v3553_v25 = vld [vmem:[#allocation2 + $0x570] sm:$0xf]  ;;  %v4141_v26 = vld [vmem:[#allocation2 + $0x578] sm:$0xf0] }
 0x19e   :  { %v762_v37 = vmax.f32 %v681_v30, 0.0  ;;  %v3469_v30 = vld [vmem:[#allocation2 + $0x4c8] sm:$0xf]  ;;  %v3697_v20 = vld [vmem:[#allocation2 + $0x690] sm:$0xf]  ;;  %v3554_v27 = vor.u32 %v4141_v26, %v3553_v25 }
 0x19f   :  { %v4148_v25 = vld [vmem:[#allocation2 + $0x5b0] sm:$0xf0] }
 0x1a0   :  { %v4458_v41 = vpack.c.bf16 %v762_v37, %v762_v37  ;;  %v3601_v37 = vld [vmem:[#allocation2 + $0x5d0] sm:$0xf] }
 0x1a1   :  { %v706_v46 = vpop.f32.mrf.mxu3 }
 0x1a2   :  { %v707_v47 = vadd.f32 %v706_v46, %v694_v40  ;;  %v745_v5 = vpop.f32.mrf.mxu2  ;;  %1265 = vmatmul.bf16.vlgmr.msra.gmra.mxu0 %v4458_v41  ;;  %1304 = vmatmul.bf16.vlgmr.msrb.gmra.mxu3 %v4458_v41  ;;  %v4131_v40 = vld [vmem:[#allocation2 + $0x52c] sm:$0xf]  ;;  %v4117_v46 = vld [vmem:[#allocation2 + $0x4b8] sm:$0xf0] }
 0x1a3   :  { %v682_v49 = vpop.f32.mrf.mxu1  ;;  %1361 = vmatpush.bf16.msra.mxu0 %v3430_v31  ;;  %v4153_v31 = vld [vmem:[#allocation2 + $0x5d8] sm:$0xf0]  ;;  %v3522_v48 = vor.u32 %v4131_v40, %v3519_v43  ;;  %v4110_v43 = vld [vmem:[#allocation2 + $0x484] sm:$0xf] }
 0x1a4   :  { %v720_v53 = vadd.f32 %v719_v32, %v707_v47  ;;  %v721_v54 = vpop.f32.mrf.mxu0  ;;  %v4120_v32 = vld [vmem:[#allocation2 + $0x4d0] sm:$0xf0]  ;;  %v3458_v49 = vor.u32 %v4117_v46, %v3457_v44  ;;  %v3435_v44 = vld [vmem:[#allocation2 + $0x48c] sm:$0xf0] }
 0x1a5   :  { %v3470_v36 = vor.u32 %v4120_v32, %v3469_v30  ;;  %v4125_v54 = vld [vmem:[#allocation2 + $0x4fc] sm:$0xf]  ;;  %v3447_v30 = vld [vmem:[#allocation2 + $0x4a4] sm:$0xf0] }
 0x1a6   :  { %v763_v58 = vmax.f32 %v720_v53, 0.0  ;;  %v3498_v56 = vor.u32 %v4125_v54, %v3495_v55  ;;  %v4135_v54 = vld [vmem:[#allocation2 + $0x548] sm:$0xf0]  ;;  %v3673_v55 = vld [vmem:[#allocation2 + $0x660] sm:$0xf] }
 0x1a7   :  { %1362 = vmatpush.bf16.msra.mxu0 %v3418_v50  ;;  %v4128_v50 = vld [vmem:[#allocation2 + $0x514] sm:$0xf] }
 0x1a8   :  { %v766_v60 = vpack.c.bf16 %v763_v58, %v763_v58  ;;  %v3510_v53 = vor.u32 %v4128_v50, %v3507_v52  ;;  %v3445_v58 = vld [vmem:[#allocation2 + $0x498] sm:$0xf]  ;;  %v4157_v50 = vld [vmem:[#allocation2 + $0x5f8] sm:$0xf0] }
 0x1a9   :  { %v708_v42 = vpop.f32.mrf.mxu3 }
 0x1aa   :  { %v747_v2 = vpop.f32.mrf.mxu2  ;;  %1278 = vmatmul.bf16.vlgmr.msrb.gmra.mxu1 %v766_v60 }
 0x1ab   :  { %v732_v6 = vpop.f32.mrf.mxu1  ;;  %1363 = vmatpush.bf16.msra.mxu0 %v3406_v59  ;;  %1864 = vmatpush.bf16.msrb.mxu1 %v3518_v3  ;;  %v4114_v59 = vld [vmem:[#allocation2 + $0x4a0] sm:$0xf0]  ;;  %v4111_v2 = vld [vmem:[#allocation2 + $0x488] sm:$0xf0] }
 0x1ac   :  { %v733_v11 = vadd.f32 %v732_v6, %v260_v57  ;;  %v3589_v57 = vld [vmem:[#allocation2 + $0x5b8] sm:$0xf]  ;;  %v3434_v3 = vor.u32 %v4111_v2, %v3433_v1  ;;  %v4147_v6 = vld [vmem:[#allocation2 + $0x5a8] sm:$0xf0]  ;;  %v4154_v1 = vld [vmem:[#allocation2 + $0x5e0] sm:$0xf0] }
 0x1ad   :  { %v3590_v42 = vor.u32 %v4150_v61, %v3589_v57  ;;  %v3578_v8 = vor.u32 %v4147_v6, %v3577_v4  ;;  %v3610_v2 = vor.u32 %v4154_v1, %v3609_v63  ;;  %v4168_v4 = vld [vmem:[#allocation2 + $0x650] sm:$0xf0] }
 0x1ae   :  { %v746_v17 = vadd.f32 %v745_v5, %v733_v11  ;;  %v3602_v5 = vor.u32 %v4153_v31, %v3601_v37  ;;  %v3541_v31 = vld [vmem:[#allocation2 + $0x558] sm:$0xf]  ;;  %v4140_v6 = vld [vmem:[#allocation2 + $0x574] sm:$0xf] }
 0x1af   :  { %1364 = vmatpush.bf16.msra.mxu0 %v3394_v7  ;;  %1865 = vmatpush.bf16.msrb.mxu1 %v3506_v10  ;;  %v4119_v7 = vld [vmem:[#allocation2 + $0x4cc] sm:$0xf]  ;;  %v3615_v10 = vld [vmem:[#allocation2 + $0x5f4] sm:$0xf0]  ;;  %v3542_v40 = vor.u32 %v4138_v38, %v3541_v31  ;;  %v3573_v31 = vld [vmem:[#allocation2 + $0x590] sm:$0xf] }
 0x1b0   :  { %v3618_v45 = vor.u32 %v4155_v9, %v3615_v10  ;;  %v3699_v9 = vld [vmem:[#allocation2 + $0x69c] sm:$0xf0]  ;;  %v4145_v38 = vld [vmem:[#allocation2 + $0x598] sm:$0xf0] }
 0x1b2   :  { %v758_v21 = vpop.f32.mrf.mxu3  ;;  %1317 = vmatmul.bf16.vlgmr.msrb.gmra.mxu0 %v766_v60  ;;  %1356 = vmatmul.bf16.vlgmr.msra.gmra.mxu3 %v766_v60  ;;  %v3446_v60 = vor.u32 %v4114_v59, %v3445_v58  ;;  %v4171_v58 = vld [vmem:[#allocation2 + $0x668] sm:$0xf0] }
 0x1b3   :  { %v759_v22 = vadd.f32 %v758_v21, %v746_v17  ;;  %v734_v23 = vpop.f32.mrf.mxu1  ;;  %1365 = vmatpush.bf16.msra.mxu0 %v3382_v12  ;;  %1866 = vmatpush.bf16.msrb.mxu1 %v3494_v16  ;;  %v4144_v12 = vld [vmem:[#allocation2 + $0x590] sm:$0xf0]  ;;  %v4143_v59 = vld [vmem:[#allocation2 + $0x58c] sm:$0xf]  ;;  %v3674_v57 = vor.u32 %v4171_v58, %v3673_v55  ;;  %v3651_v58 = vld [vmem:[#allocation2 + $0x63c] sm:$0xf0] }
 0x1b4   :  { %v3566_v15 = vor.u32 %v4144_v12, %v3565_v51  ;;  %v4180_v16 = vld [vmem:[#allocation2 + $0x6b0] sm:$0xf0]  ;;  %v3603_v23 = vld [vmem:[#allocation2 + $0x5dc] sm:$0xf0]  ;;  %v4151_v51 = vld [vmem:[#allocation2 + $0x5c8] sm:$0xf0] }
 0x1b5   :  { %v764_v29 = vmax.f32 %v759_v22, 0.0  ;;  %v4116_v17 = vld [vmem:[#allocation2 + $0x4b4] sm:$0xf]  ;;  %v3710_v19 = vor.u32 %v4180_v16, %v3709_v14  ;;  %v3649_v14 = vld [vmem:[#allocation2 + $0x630] sm:$0xf] }
 0x1b6   :  { %v3462_v21 = vor.u32 %v4116_v17, %v3459_v18  ;;  %v4152_v22 = vld [vmem:[#allocation2 + $0x5d4] sm:$0xf]  ;;  %v4137_v16 = vld [vmem:[#allocation2 + $0x55c] sm:$0xf]  ;;  %v3543_v18 = vld [vmem:[#allocation2 + $0x564] sm:$0xf0] }
 0x1b7   :  { %v767_v34 = vpack.c.bf16 %v764_v29, %v764_v29  ;;  %1366 = vmatpush.bf16.msra.mxu0 %v3370_v24  ;;  %1867 = vmatpush.bf16.msrb.mxu1 %v3482_v28  ;;  %v3606_v24 = vor.u32 %v4152_v22, %v3603_v23  ;;  %v4177_v28 = vld [vmem:[#allocation2 + $0x698] sm:$0xf0]  ;;  %v3546_v22 = vor.u32 %v4137_v16, %v3543_v18  ;;  %v3627_v16 = vld [vmem:[#allocation2 + $0x60c] sm:$0xf0] }
 0x1b8   :  { %1890 = vmatpush.bf16.msrb.mxu3 %v3710_v19  ;;  %v4113_v29 = vld [vmem:[#allocation2 + $0x49c] sm:$0xf]  ;;  %v3698_v32 = vor.u32 %v4177_v28, %v3697_v20  ;;  %v4162_v28 = vld [vmem:[#allocation2 + $0x620] sm:$0xf0] }
 0x1b9   :  { %1291 = vmatmul.bf16.vlgmr.msra.gmra.mxu2 %v767_v34  ;;  %v4173_v19 = vld [vmem:[#allocation2 + $0x67c] sm:$0xf] }
 0x1ba   :  { %v760_v47 = vpop.f32.mrf.mxu3  ;;  %1330 = vmatmul.bf16.vlgmr.msra.gmra.mxu1 %v767_v34  ;;  %1877 = vmatpush.bf16.msra.mxu2 %v3614_v33  ;;  %v3450_v33 = vor.u32 %v4113_v29, %v3447_v30  ;;  %v4134_v29 = vld [vmem:[#allocation2 + $0x544] sm:$0xf] }
 0x1bb   :  { %1367 = vmatpush.bf16.msra.mxu0 %v3358_v35  ;;  %1868 = vmatpush.bf16.msrb.mxu1 %v3470_v36  ;;  %v3591_v35 = vld [vmem:[#allocation2 + $0x5c4] sm:$0xf0]  ;;  %v4174_v36 = vld [vmem:[#allocation2 + $0x680] sm:$0xf0]  ;;  %v3438_v47 = vor.u32 %v4110_v43, %v3435_v44 }
 0x1bc   :  { %1891 = vmatpush.bf16.msrb.mxu3 %v3698_v32  ;;  %v3686_v46 = vor.u32 %v4174_v36, %v3685_v39  ;;  %v3531_v32 = vld [vmem:[#allocation2 + $0x54c] sm:$0xf0]  ;;  %v3574_v39 = vor.u32 %v4145_v38, %v3573_v31  ;;  %v4159_v36 = vld [vmem:[#allocation2 + $0x608] sm:$0xf0] }
 0x1be   :  { %1878 = vmatpush.bf16.msra.mxu2 %v3602_v5  ;;  %v4146_v5 = vld [vmem:[#allocation2 + $0x5a4] sm:$0xf] }
 0x1bf   :  { %1368 = vmatpush.bf16.msra.mxu0 %v3346_v13  ;;  %1869 = vmatpush.bf16.msrb.mxu1 %v3458_v49  ;;  %v3579_v13 = vld [vmem:[#allocation2 + $0x5ac] sm:$0xf0] }
 0x1c0   :  { %v3582_v49 = vor.u32 %v4146_v5, %v3579_v13  ;;  %1892 = vmatpush.bf16.msrb.mxu3 %v3686_v46  ;;  %v4167_v46 = vld [vmem:[#allocation2 + $0x64c] sm:$0xf]  ;;  %v3525_v5 = vld [vmem:[#allocation2 + $0x530] sm:$0xf] }
 0x1c2   :  { %1369 = vmatmul.bf16.vlgmr.msra.gmra.mxu0 %v767_v34  ;;  %1879 = vmatpush.bf16.msra.mxu2 %v3590_v42  ;;  %v4149_v34 = vld [vmem:[#allocation2 + $0x5bc] sm:$0xf]  ;;  %v3711_v42 = vld [vmem:[#allocation2 + $0x6b4] sm:$0xf0] }
 0x1c3   :  { %1903 = vmatpush.bf16.msrb.mxu0 %v3522_v48  ;;  %1870 = vmatpush.bf16.msrb.mxu1 %v3446_v60  ;;  %v3594_v37 = vor.u32 %v4149_v34, %v3591_v35  ;;  %v3621_v48 = vld [vmem:[#allocation2 + $0x5f0] sm:$0xf]  ;;  %v3567_v60 = vld [vmem:[#allocation2 + $0x594] sm:$0xf0]  ;;  %v3534_v35 = vor.u32 %v4134_v29, %v3531_v32 }
 0x1c4   :  { %v3622_v52 = vor.u32 %v4157_v50, %v3621_v48  ;;  %v3570_v61 = vor.u32 %v4143_v59, %v3567_v60  ;;  %1893 = vmatpush.bf16.msrb.mxu3 %v3674_v57  ;;  %v3675_v34 = vld [vmem:[#allocation2 + $0x66c] sm:$0xf0]  ;;  %v4133_v48 = vld [vmem:[#allocation2 + $0x538] sm:$0xf0]  ;;  %v4142_v50 = vld [vmem:[#allocation2 + $0x580] sm:$0xf0] }
 0x1c5   :  { %v3513_v59 = vld [vmem:[#allocation2 + $0x518] sm:$0xf]  ;;  %v4130_v57 = vld [vmem:[#allocation2 + $0x520] sm:$0xf0] }
 0x1c6   :  { %1880 = vmatpush.bf16.msra.mxu2 %v3578_v8  ;;  %v3555_v8 = vld [vmem:[#allocation2 + $0x57c] sm:$0xf0]  ;;  %v3514_v63 = vor.u32 %v4130_v57, %v3513_v59 }
 0x1c7   :  { %1904 = vmatpush.bf16.msrb.mxu0 %v3510_v53  ;;  %1871 = vmatpush.bf16.msrb.mxu1 %v3434_v3  ;;  %v3529_v53 = vld [vmem:[#allocation2 + $0x540] sm:$0xf]  ;;  %v3661_v3 = vld [vmem:[#allocation2 + $0x648] sm:$0xf]  ;;  %v3558_v10 = vor.u32 %v4140_v6, %v3555_v8  ;;  %v4127_v8 = vld [vmem:[#allocation2 + $0x508] sm:$0xf0] }
 0x1c8   :  { %v3501_v6 = vld [vmem:[#allocation2 + $0x500] sm:$0xf] }
 0x1c9   :  { %1343 = vmatmul.bf16.vlgmr.msrb.gmra.mxu2 %v4458_v41  ;;  %v3471_v41 = vld [vmem:[#allocation2 + $0x4d4] sm:$0xf0] }
 0x1ca   :  { %v3474_v11 = vor.u32 %v4119_v7, %v3471_v41  ;;  %1881 = vmatpush.bf16.msra.mxu2 %v3566_v15  ;;  %v3662_v7 = vor.u32 %v4168_v4, %v3661_v3  ;;  %v4176_v41 = vld [vmem:[#allocation2 + $0x694] sm:$0xf]  ;;  %v4165_v15 = vld [vmem:[#allocation2 + $0x638] sm:$0xf0]  ;;  %v3639_v4 = vld [vmem:[#allocation2 + $0x624] sm:$0xf0] }
 0x1cb   :  { %1905 = vmatpush.bf16.msrb.mxu0 %v3498_v56  ;;  %1916 = vmatpush.bf16.msra.mxu1 %v3618_v45  ;;  %v3530_v56 = vor.u32 %v4135_v54, %v3529_v53  ;;  %v3597_v45 = vld [vmem:[#allocation2 + $0x5c0] sm:$0xf]  ;;  %v3650_v17 = vor.u32 %v4165_v15, %v3649_v14  ;;  %v3526_v54 = vor.u32 %v4133_v48, %v3525_v5  ;;  %v4161_v3 = vld [vmem:[#allocation2 + $0x61c] sm:$0xf]  ;;  %v4158_v15 = vld [vmem:[#allocation2 + $0x604] sm:$0xf] }
 0x1cc   :  { %v3598_v12 = vor.u32 %v4151_v51, %v3597_v45  ;;  %1894 = vmatpush.bf16.msrb.mxu3 %v3662_v7  ;;  %v3642_v7 = vor.u32 %v4161_v3, %v3639_v4  ;;  %v3502_v45 = vor.u32 %v4127_v8, %v3501_v6  ;;  %v3630_v18 = vor.u32 %v4158_v15, %v3627_v16  ;;  %v4181_v5 = vld [vmem:[#allocation2 + $0x6b8] sm:$0xf0]  ;;  %v4197_v3 = vld [vmem:[%s5083_s5 + $0x74] sm:$0xf0]  ;;  %v3769_v4 = vld [vmem:[%s5083_s5 + $0x60] sm:$0xf] }
 0x1cd   :  { %v4195_v8 = vld [vmem:[%s5083_s5 + $0x64] sm:$0xf0] }
 0x1ce   :  { %1882 = vmatpush.bf16.msra.mxu2 %v3554_v27  ;;  %v3637_v27 = vld [vmem:[#allocation2 + $0x618] sm:$0xf] }
 0x1cf   :  { %1906 = vmatpush.bf16.msrb.mxu0 %v3486_v0  ;;  %1917 = vmatpush.bf16.msra.mxu1 %v3606_v24  ;;  %v3714_v0 = vor.u32 %v4179_v62, %v3711_v42  ;;  %v3585_v24 = vld [vmem:[#allocation2 + $0x5a8] sm:$0xf]  ;;  %v3638_v30 = vor.u32 %v4162_v28, %v3637_v27  ;;  %v4139_v62 = vld [vmem:[#allocation2 + $0x568] sm:$0xf0]  ;;  %v4470_v42 = vld [vmem:[%s5085_s7] sm:$0x22] }
 0x1d0   :  { %v3586_v20 = vor.u32 %v4148_v25, %v3585_v24  ;;  %1895 = vmatpush.bf16.msrb.mxu3 %v3650_v17  ;;  %v868_v1 = vunpack.c.h.bf16 %v4470_v42  ;;  %v867_v14 = vunpack.c.l.bf16 %v4470_v42  ;;  %v3489_v17 = vld [vmem:[#allocation2 + $0x4e8] sm:$0xf]  ;;  %v3477_v25 = vld [vmem:[#allocation2 + $0x4d0] sm:$0xf] }
 0x1d2   :  { %1883 = vmatpush.bf16.msra.mxu2 %v3542_v40  ;;  %v3625_v40 = vld [vmem:[#allocation2 + $0x600] sm:$0xf] }
 0x1d3   :  { %1907 = vmatpush.bf16.msrb.mxu0 %v3474_v11  ;;  %1918 = vmatpush.bf16.msra.mxu1 %v3594_v37  ;;  %v3702_v11 = vor.u32 %v4176_v41, %v3699_v9  ;;  %v3626_v44 = vor.u32 %v4159_v36, %v3625_v40  ;;  %v3537_v41 = vld [vmem:[#allocation2 + $0x548] sm:$0xf]  ;;  %v4136_v9 = vld [vmem:[#allocation2 + $0x550] sm:$0xf0]  ;;  %v3453_v36 = vld [vmem:[#allocation2 + $0x4a0] sm:$0xf] }
 0x1d4   :  { %1896 = vmatpush.bf16.msrb.mxu3 %v3638_v30  ;;  %v3538_v51 = vor.u32 %v4136_v9, %v3537_v41  ;;  %v3681_v9 = vld [vmem:[#allocation2 + $0x668] sm:$0xf] }
 0x1d6   :  { %1884 = vmatpush.bf16.msra.mxu2 %v3530_v56  ;;  %v4164_v56 = vld [vmem:[#allocation2 + $0x634] sm:$0xf] }
 0x1d7   :  { %1908 = vmatpush.bf16.msrb.mxu0 %v3462_v21  ;;  %1919 = vmatpush.bf16.msra.mxu1 %v3582_v49  ;;  %v3687_v21 = vld [vmem:[#allocation2 + $0x684] sm:$0xf0]  ;;  %v3561_v49 = vld [vmem:[#allocation2 + $0x578] sm:$0xf]  ;;  %v3654_v60 = vor.u32 %v4164_v56, %v3651_v58  ;;  %v4112_v56 = vld [vmem:[#allocation2 + $0x490] sm:$0xf0] }
 0x1d8   :  { %v3690_v23 = vor.u32 %v4173_v19, %v3687_v21  ;;  %v3562_v55 = vor.u32 %v4142_v50, %v3561_v49  ;;  %1897 = vmatpush.bf16.msrb.mxu3 %v3626_v44  ;;  %v4124_v19 = vld [vmem:[#allocation2 + $0x4f0] sm:$0xf0]  ;;  %v4489_v58 = vld [vmem:[%s5085_s7 + $0x8] sm:$0x2] }
 0x1d9   :  { %v3490_v21 = vor.u32 %v4124_v19, %v3489_v17  ;;  %v3669_v17 = vld [vmem:[#allocation2 + $0x650] sm:$0xf] }
 0x1da   :  { %1929 = vmatpush.bf16.msrb.mxu2 %v3714_v0 }
 0x1db   :  { %1909 = vmatpush.bf16.msrb.mxu0 %v3450_v33  ;;  %1920 = vmatpush.bf16.msra.mxu1 %v3570_v61  ;;  %v4170_v33 = vld [vmem:[#allocation2 + $0x664] sm:$0xf]  ;;  %v3549_v61 = vld [vmem:[#allocation2 + $0x560] sm:$0xf] }
 0x1dc   :  { %v3678_v37 = vor.u32 %v4170_v33, %v3675_v34  ;;  %1942 = vmatpush.bf16.msra.mxu3 %v3526_v54  ;;  %v3550_v0 = vor.u32 %v4139_v62, %v3549_v61  ;;  %v3465_v33 = vld [vmem:[#allocation2 + $0x4b8] sm:$0xf]  ;;  %v4118_v34 = vld [vmem:[#allocation2 + $0x4c0] sm:$0xf0]  ;;  %v869_v61 = vunpack.c.l.bf16 %v4489_v58  ;;  %v3693_v62 = vld [vmem:[#allocation2 + $0x680] sm:$0xf] }
 0x1dd   :  { %v4235_v58 = vld [vmem:[%s5084_s6 + $0x28] sm:$0xff] }
 0x1de   :  { %1930 = vmatpush.bf16.msrb.mxu2 %v3702_v11  ;;  %v872_v41 = vperm.slane %v869_v61, 2 }
 0x1df   :  { %1910 = vmatpush.bf16.msrb.mxu0 %v3438_v47  ;;  %1921 = vmatpush.bf16.msra.mxu1 %v3558_v10  ;;  %v3663_v47 = vld [vmem:[#allocation2 + $0x654] sm:$0xf0] }
 0x1e0   :  { %v3666_v13 = vor.u32 %v4167_v46, %v3663_v47  ;;  %1943 = vmatpush.bf16.msra.mxu3 %v3514_v63  ;;  %v3717_v47 = vld [vmem:[#allocation2 + $0x6b0] sm:$0xf]  ;;  %v4175_v63 = vld [vmem:[#allocation2 + $0x688] sm:$0xf0] }
 0x1e1   :  { %v3718_v50 = vor.u32 %v4181_v5, %v3717_v47  ;;  %v3694_v6 = vor.u32 %v4175_v63, %v3693_v62  ;;  %v3825_v47 = vld [vmem:[%s5083_s5 + $0xd0] sm:$0xf]  ;;  %v3737_v63 = vld [vmem:[%s5083_s5 + $0x20] sm:$0xf] }
 0x1e2   :  { %1931 = vmatpush.bf16.msrb.mxu2 %v3690_v23  ;;  %v870_v23 = vperm.slane %v867_v14, 2 }
 0x1e3   :  { %1955 = vmatpush.bf16.msra.mxu0 %v3622_v52  ;;  %1922 = vmatpush.bf16.msra.mxu1 %v3546_v22 }
 0x1e4   :  { %1944 = vmatpush.bf16.msra.mxu3 %v3502_v45  ;;  %v3761_v45 = vld [vmem:[%s5083_s5 + $0x50] sm:$0xf] }
 0x1e6   :  { %1932 = vmatpush.bf16.msrb.mxu2 %v3678_v37  ;;  %v3466_v37 = vor.u32 %v4118_v34, %v3465_v33 }
 0x1e7   :  { %1956 = vmatpush.bf16.msra.mxu0 %v3610_v2  ;;  %1923 = vmatpush.bf16.msra.mxu1 %v3534_v35 }
 0x1e8   :  { %1945 = vmatpush.bf16.msra.mxu3 %v3490_v21 }
 0x1ea   :  { %1933 = vmatpush.bf16.msrb.mxu2 %v3666_v13 }
 0x1eb   :  { %1957 = vmatpush.bf16.msra.mxu0 %v3598_v12  ;;  %v871_v12 = vperm.slane %v868_v1, 2 }
 0x1ee   :  { %1934 = vmatpush.bf16.msrb.mxu2 %v3654_v60 }
 0x1ef   :  { %1958 = vmatpush.bf16.msra.mxu0 %v3586_v20  ;;  %v4121_v20 = vld [vmem:[#allocation2 + $0x4d8] sm:$0xf0] }
 0x1f0   :  { %v3478_v28 = vor.u32 %v4121_v20, %v3477_v25  ;;  %v4166_v20 = vld [vmem:[#allocation2 + $0x640] sm:$0xf0] }
 0x1f2   :  { %1935 = vmatpush.bf16.msrb.mxu2 %v3642_v7  ;;  %1946 = vmatpush.bf16.msra.mxu3 %v3478_v28  ;;  %v4213_v28 = vld [vmem:[%s5083_s5 + $0xf4] sm:$0xf0] }
 0x1f3   :  { %1959 = vmatpush.bf16.msra.mxu0 %v3574_v39 }
 0x1f6   :  { %1936 = vmatpush.bf16.msrb.mxu2 %v3630_v18  ;;  %1947 = vmatpush.bf16.msra.mxu3 %v3466_v37  ;;  %v4169_v18 = vld [vmem:[#allocation2 + $0x658] sm:$0xf0]  ;;  %v3833_v37 = vld [vmem:[%s5083_s5 + $0xe0] sm:$0xf] }
 0x1f7   :  { %1960 = vmatpush.bf16.msra.mxu0 %v3562_v55  ;;  %v3441_v55 = vld [vmem:[#allocation2 + $0x488] sm:$0xf] }
 0x1f8   :  { %v3442_v59 = vor.u32 %v4112_v56, %v3441_v55  ;;  %v4207_v56 = vld [vmem:[%s5083_s5 + $0xc4] sm:$0xf0] }
 0x1fb   :  { %1961 = vmatpush.bf16.msra.mxu0 %v3550_v0 }
 0x1ff   :  { %1962 = vmatpush.bf16.msra.mxu0 %v3538_v51  ;;  %v4193_v51 = vld [vmem:[%s5083_s5 + $0x54] sm:$0xf0] }
 0x200   :  { %v3762_v19 = vor.u32 %v4193_v51, %v3761_v45  ;;  %v4203_v51 = vld [vmem:[%s5083_s5 + $0xa4] sm:$0xf0] }
 0x21f   :  { %v4465_v26 = vpop.f32.mrf.mxu0 }
 0x220   :  { %v1267_v35 = vadd.f32 %v4465_v26, %v870_v23  ;;  %v3657_v23 = vld [vmem:[#allocation2 + $0x638] sm:$0xf] }
 0x225   :  { %v1305_v43 = vpop.f32.mrf.mxu3 }
 0x226   :  { %v1306_v22 = vadd.f32 %v1305_v43, %v871_v12  ;;  %v4115_v43 = vld [vmem:[#allocation2 + $0x4a8] sm:$0xf0] }
 0x227   :  { %v1268_v52 = vpop.f32.mrf.mxu0  ;;  %v1279_v53 = vpop.f32.mrf.mxu1  ;;  %v3454_v13 = vor.u32 %v4115_v43, %v3453_v36  ;;  %v4160_v36 = vld [vmem:[#allocation2 + $0x610] sm:$0xf0] }
 0x228   :  { %v1280_v38 = vadd.f32 %v1279_v53, %v1267_v35  ;;  %v3705_v52 = vld [vmem:[#allocation2 + $0x698] sm:$0xf]  ;;  %v4178_v53 = vld [vmem:[#allocation2 + $0x6a0] sm:$0xf0]  ;;  %v4163_v35 = vld [vmem:[#allocation2 + $0x628] sm:$0xf0] }
 0x229   :  { %1948 = vmatpush.bf16.msra.mxu3 %v3454_v13  ;;  %v3706_v57 = vor.u32 %v4178_v53, %v3705_v52  ;;  %v4209_v13 = vld [vmem:[%s5083_s5 + $0xd4] sm:$0xf0]  ;;  %v3745_v52 = vld [vmem:[%s5083_s5 + $0x30] sm:$0xf]  ;;  %v3817_v53 = vld [vmem:[%s5083_s5 + $0xc0] sm:$0xf] }
 0x22d   :  { %v1307_v2 = vpop.f32.mrf.mxu3  ;;  %1949 = vmatpush.bf16.msra.mxu3 %v3442_v59  ;;  %v4194_v59 = vld [vmem:[%s5083_s5 + $0x64] sm:$0xf] }
 0x22e   :  { %v3777_v2 = vld [vmem:[%s5083_s5 + $0x70] sm:$0xf] }
 0x22f   :  { %v1281_v10 = vpop.f32.mrf.mxu1  ;;  %v1318_v11 = vpop.f32.mrf.mxu0  ;;  %v3778_v7 = vor.u32 %v4197_v3, %v3777_v2  ;;  %v3809_v2 = vld [vmem:[%s5083_s5 + $0xb0] sm:$0xf] }
 0x230   :  { %v1319_v27 = vadd.f32 %v1318_v11, %v1306_v22  ;;  %v4172_v10 = vld [vmem:[#allocation2 + $0x670] sm:$0xf0]  ;;  %v3770_v11 = vor.u32 %v4195_v8, %v3769_v4  ;;  %v3670_v22 = vor.u32 %v4169_v18, %v3669_v17  ;;  %v4205_v4 = vld [vmem:[%s5083_s5 + $0xb4] sm:$0xf0]  ;;  %v3721_v18 = vld [vmem:[%s5083_s5] sm:$0xf] }
 0x231   :  { %v3682_v15 = vor.u32 %v4172_v10, %v3681_v9  ;;  %v3810_v8 = vor.u32 %v4205_v4, %v3809_v2  ;;  %v3729_v9 = vld [vmem:[%s5083_s5 + $0x10] sm:$0xf]  ;;  %v4185_v10 = vld [vmem:[%s5083_s5 + $0x14] sm:$0xf0]  ;;  %v3723_v2 = vld [vmem:[%s5083_s5 + $0x8] sm:$0xf0] }
 0x232   :  { %v3730_v45 = vor.u32 %v4185_v10, %v3729_v9  ;;  %v3819_v4 = vld [vmem:[%s5083_s5 + $0xc8] sm:$0xf0] }
 0x235   :  { %v4478_v24 = vpop.f32.mrf.mxu3 }
 0x237   :  { %v1320_v29 = vpop.f32.mrf.mxu0  ;;  %v1331_v30 = vpop.f32.mrf.mxu1 }
 0x238   :  { %v1332_v32 = vadd.f32 %v1331_v30, %v1319_v27  ;;  %v3841_v27 = vld [vmem:[%s5083_s5 + $0xf0] sm:$0xf]  ;;  %v3658_v30 = vor.u32 %v4166_v20, %v3657_v23  ;;  %v4201_v23 = vld [vmem:[%s5083_s5 + $0x94] sm:$0xf0]  ;;  %v3747_v20 = vld [vmem:[%s5083_s5 + $0x38] sm:$0xf0] }
 0x239   :  { %v3842_v33 = vor.u32 %v4213_v28, %v3841_v27 }
 0x23a   :  { %v1375_v31 = vmax.f32 %v1332_v32, 0.0  ;;  %v3645_v32 = vld [vmem:[#allocation2 + $0x620] sm:$0xf] }
 0x23c   :  { %v4481_v39 = vpack.c.bf16 %v1375_v31, %v1375_v31  ;;  %v1292_v40 = vpop.f32.mrf.mxu2  ;;  %v4211_v31 = vld [vmem:[%s5083_s5 + $0xe4] sm:$0xf0] }
 0x23d   :  { %v1293_v44 = vadd.f32 %v1292_v40, %v1280_v38  ;;  %v1359_v46 = vpop.f32.mrf.mxu3  ;;  %v3646_v38 = vor.u32 %v4163_v35, %v3645_v32  ;;  %v3633_v40 = vld [vmem:[#allocation2 + $0x608] sm:$0xf]  ;;  %v3785_v32 = vld [vmem:[%s5083_s5 + $0x80] sm:$0xf] }
 0x23e   :  { %1885 = vmatmul.bf16.vlgmr.msra.gmra.mxu2 %v4481_v39  ;;  %v3634_v43 = vor.u32 %v4160_v36, %v3633_v40  ;;  %v4191_v46 = vld [vmem:[%s5083_s5 + $0x44] sm:$0xf0]  ;;  %v4210_v36 = vld [vmem:[%s5083_s5 + $0xe4] sm:$0xf] }
 0x23f   :  { %v1374_v48 = vmax.f32 %v1293_v44, 0.0  ;;  %v1333_v49 = vpop.f32.mrf.mxu1  ;;  %v1370_v26 = vpop.f32.mrf.mxu0  ;;  %2280 = vmatpush.bf16.msra.mxu2 %v3778_v7  ;;  %v3753_v44 = vld [vmem:[%s5083_s5 + $0x40] sm:$0xf]  ;;  %v3763_v7 = vld [vmem:[%s5083_s5 + $0x58] sm:$0xf0] }
 0x240   :  { %v3754_v5 = vor.u32 %v4191_v46, %v3753_v44  ;;  %v3826_v49 = vor.u32 %v4209_v13, %v3825_v47  ;;  %v4228_v44 = vld [vmem:[%s5083_s5 + $0x174] sm:$0xf]  ;;  %v3907_v47 = vld [vmem:[%s5083_s5 + $0x178] sm:$0xf0]  ;;  %v3897_v13 = vld [vmem:[%s5083_s5 + $0x160] sm:$0xf] }
 0x241   :  { %v4484_v54 = vpack.c.bf16 %v1374_v48, %v1374_v48  ;;  %v4196_v48 = vld [vmem:[%s5083_s5 + $0x74] sm:$0xf] }
 0x243   :  { %1872 = vmatmul.bf16.vlgmr.msrb.gmra.mxu1 %v4484_v54  ;;  %1911 = vmatmul.bf16.vlgmr.msrb.gmra.mxu0 %v4484_v54 }
 0x244   :  { %v1294_v60 = vpop.f32.mrf.mxu2  ;;  %1968 = vmatpush.bf16.msrb.mxu1 %v3718_v50  ;;  %2281 = vmatpush.bf16.msra.mxu2 %v3770_v11  ;;  %v3801_v11 = vld [vmem:[%s5083_s5 + $0xa0] sm:$0xf] }
 0x245   :  { %v3771_v60 = vld [vmem:[%s5083_s5 + $0x68] sm:$0xf0] }
 0x246   :  { %v3774_v62 = vor.u32 %v4194_v59, %v3771_v60  ;;  %v3899_v59 = vld [vmem:[%s5083_s5 + $0x168] sm:$0xf0] }
 0x247   :  { %v1372_v0 = vpop.f32.mrf.mxu0 }
 0x248   :  { %1969 = vmatpush.bf16.msrb.mxu1 %v3706_v57  ;;  %2282 = vmatpush.bf16.msra.mxu2 %v3762_v19  ;;  %v3818_v57 = vor.u32 %v4207_v56, %v3817_v53  ;;  %v4187_v0 = vld [vmem:[%s5083_s5 + $0x24] sm:$0xf0]  ;;  %v4226_v56 = vld [vmem:[%s5083_s5 + $0x164] sm:$0xf] }
 0x249   :  { %v3738_v3 = vor.u32 %v4187_v0, %v3737_v63  ;;  %v4183_v19 = vld [vmem:[%s5083_s5 + $0x4] sm:$0xf0]  ;;  %v3902_v60 = vor.u32 %v4226_v56, %v3899_v59  ;;  %v4182_v63 = vld [vmem:[%s5083_s5 + $0x4] sm:$0xf]  ;;  %v3849_v56 = vld [vmem:[%s5083_s5 + $0x100] sm:$0xf] }
 0x24a   :  { %v4215_v59 = vld [vmem:[%s5083_s5 + $0x104] sm:$0xf0] }
 0x24c   :  { %v1344_v12 = vpop.f32.mrf.mxu2  ;;  %1970 = vmatpush.bf16.msrb.mxu1 %v3694_v6  ;;  %2283 = vmatpush.bf16.msra.mxu2 %v3754_v5  ;;  %v4192_v6 = vld [vmem:[%s5083_s5 + $0x54] sm:$0xf]  ;;  %v3910_v5 = vor.u32 %v4228_v44, %v3907_v47  ;;  %v3867_v44 = vld [vmem:[%s5083_s5 + $0x128] sm:$0xf0]  ;;  %v3857_v47 = vld [vmem:[%s5083_s5 + $0x110] sm:$0xf] }
 0x24d   :  { %v1345_v16 = vadd.f32 %v1344_v12, %v872_v41  ;;  %v3766_v41 = vor.u32 %v4192_v6, %v3763_v7  ;;  %v4190_v12 = vld [vmem:[%s5083_s5 + $0x44] sm:$0xf]  ;;  %v3726_v6 = vor.u32 %v4182_v63, %v3723_v2  ;;  %v3851_v63 = vld [vmem:[%s5083_s5 + $0x108] sm:$0xf0]  ;;  %v1478_v2 = vperm.slane %v868_v1, 3 }
 0x24f   :  { %v1358_v21 = vadd.f32 %v4478_v24, %v1345_v16  ;;  %v3802_v16 = vor.u32 %v4203_v51, %v3801_v11  ;;  %v4223_v51 = vld [vmem:[%s5083_s5 + $0x144] sm:$0xf0] }
 0x250   :  { %1971 = vmatpush.bf16.msrb.mxu1 %v3682_v15  ;;  %v3755_v15 = vld [vmem:[%s5083_s5 + $0x48] sm:$0xf0] }
 0x251   :  { %v1371_v25 = vadd.f32 %v1370_v26, %v1358_v21  ;;  %v3779_v26 = vld [vmem:[%s5083_s5 + $0x78] sm:$0xf0]  ;;  %v3758_v17 = vor.u32 %v4190_v12, %v3755_v15  ;;  %v3793_v21 = vld [vmem:[%s5083_s5 + $0x90] sm:$0xf]  ;;  %v4204_v12 = vld [vmem:[%s5083_s5 + $0xb4] sm:$0xf] }
 0x252   :  { %v3782_v50 = vor.u32 %v4196_v48, %v3779_v26  ;;  %v3794_v27 = vor.u32 %v4201_v23, %v3793_v21  ;;  %v4227_v48 = vld [vmem:[%s5083_s5 + $0x164] sm:$0xf0]  ;;  %v3873_v23 = vld [vmem:[%s5083_s5 + $0x130] sm:$0xf] }
 0x253   :  { %v1376_v29 = vmax.f32 %v1371_v25, 0.0  ;;  %1924 = vmatmul.bf16.vlgmr.msra.gmra.mxu1 %v4481_v39  ;;  %1963 = vmatmul.bf16.vlgmr.msra.gmra.mxu0 %v4481_v39  ;;  %v3834_v39 = vor.u32 %v4211_v31, %v3833_v37  ;;  %v4188_v25 = vld [vmem:[%s5083_s5 + $0x34] sm:$0xf]  ;;  %v4229_v37 = vld [vmem:[%s5083_s5 + $0x174] sm:$0xf0]  ;;  %v3898_v26 = vor.u32 %v4227_v48, %v3897_v13 }
 0x254   :  { %v1346_v24 = vpop.f32.mrf.mxu2  ;;  %1972 = vmatpush.bf16.msrb.mxu1 %v3670_v22  ;;  %v3722_v22 = vor.u32 %v4183_v19, %v3721_v18  ;;  %v3750_v28 = vor.u32 %v4188_v25, %v3747_v20  ;;  %v4186_v31 = vld [vmem:[%s5083_s5 + $0x24] sm:$0xf]  ;;  %v3883_v19 = vld [vmem:[%s5083_s5 + $0x148] sm:$0xf0]  ;;  %v4221_v25 = vld [vmem:[%s5083_s5 + $0x134] sm:$0xf0] }
 0x255   :  { %v1379_v34 = vpack.c.bf16 %v1376_v29, %v1376_v29  ;;  %v4212_v29 = vld [vmem:[%s5083_s5 + $0xf4] sm:$0xf]  ;;  %v3843_v24 = vld [vmem:[%s5083_s5 + $0xf8] sm:$0xf0]  ;;  %v4222_v18 = vld [vmem:[%s5083_s5 + $0x144] sm:$0xf] }
 0x256   :  { %v4202_v20 = vld [vmem:[%s5083_s5 + $0xa4] sm:$0xf] }
 0x257   :  { %1898 = vmatmul.bf16.vlgmr.msrb.gmra.mxu3 %v1379_v34  ;;  %1937 = vmatmul.bf16.vlgmr.msrb.gmra.mxu2 %v1379_v34  ;;  %v4198_v13 = vld [vmem:[%s5083_s5 + $0x84] sm:$0xf] }
 0x258   :  { %1973 = vmatpush.bf16.msrb.mxu1 %v3658_v30  ;;  %2293 = vmatpush.bf16.msrb.mxu3 %v3842_v33  ;;  %v3846_v30 = vor.u32 %v4212_v29, %v3843_v24  ;;  %v4199_v33 = vld [vmem:[%s5083_s5 + $0x84] sm:$0xf0]  ;;  %v4220_v29 = vld [vmem:[%s5083_s5 + $0x134] sm:$0xf]  ;;  %v3875_v24 = vld [vmem:[%s5083_s5 + $0x138] sm:$0xf0] }
 0x259   :  { %v3786_v35 = vor.u32 %v4199_v33, %v3785_v32  ;;  %v3878_v32 = vor.u32 %v4220_v29, %v3875_v24  ;;  %v4236_v29 = vld [vmem:[%s5084_s6 + $0x30] sm:$0xff]  ;;  %v4233_v24 = vld [vmem:[%s5084_s6 + $0x18] sm:$0xff] }
 0x25c   :  { %1974 = vmatpush.bf16.msrb.mxu1 %v3646_v38  ;;  %2294 = vmatpush.bf16.msrb.mxu3 %v3834_v39  ;;  %v3739_v38 = vld [vmem:[%s5083_s5 + $0x28] sm:$0xf0] }
 0x25d   :  { %v3742_v40 = vor.u32 %v4186_v31, %v3739_v38 }
 0x260   :  { %1975 = vmatpush.bf16.msrb.mxu1 %v3634_v43  ;;  %2295 = vmatpush.bf16.msrb.mxu3 %v3826_v49  ;;  %v3835_v43 = vld [vmem:[%s5083_s5 + $0xe8] sm:$0xf0]  ;;  %v4184_v49 = vld [vmem:[%s5083_s5 + $0x14] sm:$0xf] }
 0x261   :  { %v3838_v46 = vor.u32 %v4210_v36, %v3835_v43  ;;  %v4218_v36 = vld [vmem:[%s5083_s5 + $0x124] sm:$0xf] }
 0x263   :  { %1976 = vmatmul.bf16.vlgmr.msrb.gmra.mxu1 %v1379_v34  ;;  %v3905_v34 = vld [vmem:[%s5083_s5 + $0x170] sm:$0xf] }
 0x264   :  { %2319 = vmatpush.bf16.msra.mxu1 %v3782_v50  ;;  %2296 = vmatpush.bf16.msrb.mxu3 %v3818_v57  ;;  %v3906_v39 = vor.u32 %v4229_v37, %v3905_v34  ;;  %v3731_v50 = vld [vmem:[%s5083_s5 + $0x18] sm:$0xf0]  ;;  %v3889_v57 = vld [vmem:[%s5083_s5 + $0x150] sm:$0xf]  ;;  %v4219_v37 = vld [vmem:[%s5083_s5 + $0x124] sm:$0xf0] }
 0x265   :  { %v3734_v53 = vor.u32 %v4184_v49, %v3731_v50  ;;  %v3787_v49 = vld [vmem:[%s5083_s5 + $0x88] sm:$0xf0]  ;;  %v3859_v50 = vld [vmem:[%s5083_s5 + $0x118] sm:$0xf0] }
 0x266   :  { %2306 = vmatpush.bf16.msrb.mxu0 %v3906_v39  ;;  %v4200_v39 = vld [vmem:[%s5083_s5 + $0x94] sm:$0xf] }
 0x267   :  { %1950 = vmatmul.bf16.vlgmr.msra.gmra.mxu3 %v4484_v54  ;;  %v4189_v54 = vld [vmem:[%s5083_s5 + $0x34] sm:$0xf0] }
 0x268   :  { %v3746_v55 = vor.u32 %v4189_v54, %v3745_v52  ;;  %2320 = vmatpush.bf16.msra.mxu1 %v3774_v62  ;;  %2297 = vmatpush.bf16.msrb.mxu3 %v3810_v8  ;;  %v4208_v52 = vld [vmem:[%s5083_s5 + $0xd4] sm:$0xf]  ;;  %v3827_v54 = vld [vmem:[%s5083_s5 + $0xd8] sm:$0xf0]  ;;  %v4225_v62 = vld [vmem:[%s5083_s5 + $0x154] sm:$0xf0] }
 0x269   :  { %v3890_v0 = vor.u32 %v4225_v62, %v3889_v57  ;;  %v4224_v8 = vld [vmem:[%s5083_s5 + $0x154] sm:$0xf]  ;;  %v1477_v57 = vperm.slane %v867_v14, 3  ;;  %v3850_v62 = vor.u32 %v4215_v59, %v3849_v56 }
 0x26a   :  { %2284 = vmatpush.bf16.msra.mxu2 %v3746_v55  ;;  %v3830_v55 = vor.u32 %v4208_v52, %v3827_v54  ;;  %2307 = vmatpush.bf16.msrb.mxu0 %v3898_v26  ;;  %v4216_v26 = vld [vmem:[%s5083_s5 + $0x114] sm:$0xf]  ;;  %v3790_v52 = vor.u32 %v4198_v13, %v3787_v49 }
 0x26b   :  { %v3862_v54 = vor.u32 %v4216_v26, %v3859_v50 }
 0x26c   :  { %2321 = vmatpush.bf16.msra.mxu1 %v3766_v41  ;;  %2298 = vmatpush.bf16.msrb.mxu3 %v3802_v16  ;;  %v3891_v41 = vld [vmem:[%s5083_s5 + $0x158] sm:$0xf0] }
 0x26d   :  { %v3894_v9 = vor.u32 %v4224_v8, %v3891_v41 }
 0x26e   :  { %2285 = vmatpush.bf16.msra.mxu2 %v3738_v3  ;;  %v4206_v3 = vld [vmem:[%s5083_s5 + $0xc4] sm:$0xf]  ;;  %2308 = vmatpush.bf16.msrb.mxu0 %v3890_v0 }
 0x26f   :  { %v3822_v7 = vor.u32 %v4206_v3, %v3819_v4  ;;  %v4237_v4 = vld [vmem:[%s5084_s6 + $0x38] sm:$0xff] }
 0x270   :  { %2322 = vmatpush.bf16.msra.mxu1 %v3758_v17  ;;  %2299 = vmatpush.bf16.msrb.mxu3 %v3794_v27  ;;  %v3811_v17 = vld [vmem:[%s5083_s5 + $0xb8] sm:$0xf0]  ;;  %v3874_v27 = vor.u32 %v4221_v25, %v3873_v23 }
 0x271   :  { %v3814_v21 = vor.u32 %v4204_v12, %v3811_v17 }
 0x272   :  { %2286 = vmatpush.bf16.msra.mxu2 %v3730_v45  ;;  %v3881_v45 = vld [vmem:[%s5083_s5 + $0x140] sm:$0xf] }
 0x273   :  { %v3882_v16 = vor.u32 %v4223_v51, %v3881_v45 }
 0x274   :  { %2323 = vmatpush.bf16.msra.mxu1 %v3750_v28  ;;  %2300 = vmatpush.bf16.msrb.mxu3 %v3786_v35  ;;  %v3803_v28 = vld [vmem:[%s5083_s5 + $0xa8] sm:$0xf0]  ;;  %v3865_v35 = vld [vmem:[%s5083_s5 + $0x120] sm:$0xf] }
 0x275   :  { %2309 = vmatpush.bf16.msrb.mxu0 %v3882_v16  ;;  %v3866_v38 = vor.u32 %v4219_v37, %v3865_v35  ;;  %v4230_v35 = vld [vmem:[%s5084_s6] sm:$0xff]  ;;  %v4239_v37 = vld [vmem:[%s5084_s6 + $0x48] sm:$0xff] }
 0x276   :  { %2287 = vmatpush.bf16.msra.mxu2 %v3722_v22  ;;  %v3886_v22 = vor.u32 %v4222_v18, %v3883_v19  ;;  %v1479_v19 = vperm.slane %v869_v61, 3  ;;  %v4234_v61 = vld [vmem:[%s5084_s6 + $0x20] sm:$0xff] }
 0x278   :  { %2324 = vmatpush.bf16.msra.mxu1 %v3742_v40  ;;  %2345 = vmatpush.bf16.msra.mxu3 %v3910_v5  ;;  %v3795_v40 = vld [vmem:[%s5083_s5 + $0x98] sm:$0xf0]  ;;  %v4217_v5 = vld [vmem:[%s5083_s5 + $0x114] sm:$0xf0] }
 0x279   :  { %2310 = vmatpush.bf16.msrb.mxu0 %v3874_v27  ;;  %v3798_v43 = vor.u32 %v4200_v39, %v3795_v40  ;;  %v3858_v48 = vor.u32 %v4217_v5, %v3857_v47  ;;  %v2035_v39 = vld [vmem:[%s5085_s7] sm:$0x44] }
 0x27a   :  { %2332 = vmatpush.bf16.msrb.mxu2 %v3846_v30  ;;  %v3806_v30 = vor.u32 %v4202_v20, %v3803_v28  ;;  %v2037_v13 = vunpack.c.h.bf16 %v2035_v39 }
 0x27c   :  { %2325 = vmatpush.bf16.msra.mxu1 %v3734_v53  ;;  %2346 = vmatpush.bf16.msra.mxu3 %v3902_v60  ;;  %v4214_v60 = vld [vmem:[%s5083_s5 + $0x104] sm:$0xf]  ;;  %v2039_v49 = vperm.slane %v2037_v13, 4 }
 0x27d   :  { %2311 = vmatpush.bf16.msrb.mxu0 %v3866_v38  ;;  %v3854_v0 = vor.u32 %v4214_v60, %v3851_v63 }
 0x27e   :  { %2333 = vmatpush.bf16.msrb.mxu2 %v3838_v46  ;;  %v3870_v46 = vor.u32 %v4218_v36, %v3867_v44 }
 0x280   :  { %2326 = vmatpush.bf16.msra.mxu1 %v3726_v6  ;;  %2347 = vmatpush.bf16.msra.mxu3 %v3894_v9 }
 0x281   :  { %2312 = vmatpush.bf16.msrb.mxu0 %v3858_v48 }
 0x282   :  { %2334 = vmatpush.bf16.msrb.mxu2 %v3830_v55 }
 0x284   :  { %2348 = vmatpush.bf16.msra.mxu3 %v3886_v22 }
 0x285   :  { %2313 = vmatpush.bf16.msrb.mxu0 %v3850_v62 }
 0x286   :  { %2335 = vmatpush.bf16.msrb.mxu2 %v3822_v7 }
 0x288   :  { %2349 = vmatpush.bf16.msra.mxu3 %v3878_v32  ;;  %v4241_v32 = vld [vmem:[%s5084_s6 + $0x58] sm:$0xff] }
 0x289   :  { %2465 = vmatpush.bf16.msra.mxu0 %v4237_v4  ;;  %2482 = vmatpush.bf16.msrb.mxu1 %v4241_v32  ;;  %v2386_v4 = vld [vmem:[%s5085_s7] sm:$0x4] }
 0x28a   :  { %2336 = vmatpush.bf16.msrb.mxu2 %v3814_v21 }
 0x28c   :  { %2350 = vmatpush.bf16.msra.mxu3 %v3870_v46 }
 0x28d   :  { %2466 = vmatpush.bf16.msra.mxu0 %v4236_v29 }
 0x28e   :  { %2337 = vmatpush.bf16.msrb.mxu2 %v3806_v30  ;;  %v4232_v30 = vld [vmem:[%s5084_s6 + $0x10] sm:$0xff] }
 0x290   :  { %2351 = vmatpush.bf16.msra.mxu3 %v3862_v54 }
 0x291   :  { %2467 = vmatpush.bf16.msra.mxu0 %v4235_v58 }
 0x292   :  { %2338 = vmatpush.bf16.msrb.mxu2 %v3798_v43  ;;  %v2036_v43 = vunpack.c.l.bf16 %v2035_v39 }
 0x294   :  { %2352 = vmatpush.bf16.msra.mxu3 %v3854_v0  ;;  %v2038_v46 = vperm.slane %v2036_v43, 4 }
 0x295   :  { %2468 = vmatpush.bf16.msra.mxu0 %v4234_v61 }
 0x296   :  { %2339 = vmatpush.bf16.msrb.mxu2 %v3790_v52 }
 0x299   :  { %2469 = vmatpush.bf16.msra.mxu0 %v4233_v24 }
 0x29d   :  { %2470 = vmatpush.bf16.msra.mxu0 %v4232_v30 }
 0x2c0   :  { %v4704_v10 = vpop.f32.mrf.mxu1  ;;  %v4706_v11 = vpop.f32.mrf.mxu0 }
 0x2c1   :  { %v4717_v15 = vpop.f32.mrf.mxu2  ;;  %v1874_v3 = vadd.f32 %v4704_v10, %v1477_v57  ;;  %v1913_v14 = vadd.f32 %v4706_v11, %v1478_v2 }
 0x2c3   :  { %v1887_v8 = vadd.f32 %v4717_v15, %v1874_v3 }
 0x2c8   :  { %v1875_v33 = vpop.f32.mrf.mxu1  ;;  %v1914_v34 = vpop.f32.mrf.mxu0 }
 0x2c9   :  { %v1888_v31 = vpop.f32.mrf.mxu2  ;;  %v4231_v33 = vld [vmem:[%s5084_s6 + $0x8] sm:$0xff]  ;;  %v4240_v34 = vld [vmem:[%s5084_s6 + $0x50] sm:$0xff] }
 0x2ca   :  { %2471 = vmatpush.bf16.msra.mxu0 %v4231_v33  ;;  %2483 = vmatpush.bf16.msrb.mxu1 %v4240_v34  ;;  %v4238_v31 = vld [vmem:[%s5084_s6 + $0x40] sm:$0xff]  ;;  %v2497_v34 = vld [vmem:[%s5086_s8 + $0x18] sm:$0xf] }
 0x2cb   :  { %v2529_v39 = vunpack.c.l.bf16 %v2497_v34 }
 0x2ce   :  { %2472 = vmatpush.bf16.msra.mxu0 %v4230_v35  ;;  %2484 = vmatpush.bf16.msrb.mxu1 %v4239_v37  ;;  %v4883_v37 = vld [vmem:[%s5086_s8 + $0x50] sm:$0xff]  }
 0x2d0   :  { %v1925_v53 = vpop.f32.mrf.mxu1  ;;  %v1964_v55 = vpop.f32.mrf.mxu0 }
 0x2d1   :  { %v1926_v41 = vadd.f32 %v1925_v53, %v1913_v14  ;;  %v2387_v14 = vunpack.c.l.bf16 %v2386_v4 }
 0x2d2   :  { %2485 = vmatpush.bf16.msrb.mxu1 %v4238_v31 }
 0x2d8   :  { %v1927_v6 = vpop.f32.mrf.mxu1  ;;  %v1966_v7 = vpop.f32.mrf.mxu0 }
 0x2d9   :  { %v2388_v7 = vperm.slane %v2387_v14, 5 }
 0x2da   :  { %v1899_v9 = vpop.f32.mrf.mxu3  ;;  %v1938_v45 = vpop.f32.mrf.mxu2 }
 0x2db   :  { %v1900_v42 = vadd.f32 %v1899_v9, %v1887_v8  ;;  %v1939_v1 = vadd.f32 %v1938_v45, %v1926_v41  ;;  %v2493_v8 = vld [vmem:[%s5086_s8 + $0x8] sm:$0xf]  ;;  %v4243_v41 = vld [vmem:[%s5086_s8] sm:$0xff]  }
 0x2dc   :  { %v4245_v29 = vunpack.c.h.bf16 %v4243_v41 }
 0x2dd   :  { %v1981_v51 = vmax.f32 %v1900_v42, 0.0  ;;  %v1982_v12 = vmax.f32 %v1939_v1, 0.0  ;;  %v4274_v42 = vld [vmem:[%s5086_s8 + $0x10] sm:$0xff]  }
 0x2df   :  { %v1984_v10 = vpack.c.bf16 %v1981_v51, %v1981_v51  ;;  %v1985_v16 = vpack.c.bf16 %v1982_v12, %v1982_v12  ;;  %v2525_v51 = vunpack.c.l.bf16 %v2493_v8  ;;  %v4244_v12 = vunpack.c.l.bf16 %v4243_v41 }
 0x2e0   :  { %v1977_v17 = vpop.f32.mrf.mxu1 }
 0x2e1   :  { %2288 = vmatmul.bf16.vlgmr.msra.gmra.mxu2 %v1984_v10  ;;  %2301 = vmatmul.bf16.vlgmr.msrb.gmra.mxu3 %v1985_v16 }
 0x2e2   :  { %2327 = vmatmul.bf16.vlgmr.msra.gmra.mxu1 %v1984_v10  ;;  %v1901_v18 = vpop.f32.mrf.mxu3  ;;  %v1940_v11 = vpop.f32.mrf.mxu2 }
 0x2e3   :  { %v2494_v11 = vld [vmem:[%s5086_s8 + $0xc] sm:$0x3] }
 0x2e8   :  { %v1979_v21 = vpop.f32.mrf.mxu1 }
 0x2ea   :  { %v1951_v15 = vpop.f32.mrf.mxu3 }
 0x2eb   :  { %v1952_v22 = vadd.f32 %v1951_v15, %v1479_v19 }
 0x2ed   :  { %v1965_v23 = vadd.f32 %v1964_v55, %v1952_v22 }
 0x2ef   :  { %v1978_v25 = vadd.f32 %v1977_v17, %v1965_v23  ;;  %v4248_v17 = vunpack.c.l.bf16 %v4274_v42  ;;  %v2526_v23 = vunpack.c.l.bf16 %v2494_v11  ;;  %v2501_v11 = vld [vmem:[%s5086_s8 + $0x28] sm:$0xf] }
 0x2f1   :  { %v1983_v20 = vmax.f32 %v1978_v25, 0.0  ;;  %2340 = vmatmul.bf16.vlgmr.msrb.gmra.mxu2 %v1985_v16  ;;  %v4867_v25 = vld [vmem:[%s5086_s8 + $0x40] sm:$0xff]  }
 0x2f2   :  { %v1953_v27 = vpop.f32.mrf.mxu3  ;;  %v4261_v24 = vunpack.c.h.bf16 %v4867_v25 }
 0x2f3   :  { %v1986_v28 = vpack.c.bf16 %v1983_v20, %v1983_v20 }
 0x2f5   :  { %2314 = vmatmul.bf16.vlgmr.msrb.gmra.mxu0 %v1986_v28  ;;  %2353 = vmatmul.bf16.vlgmr.msra.gmra.mxu3 %v1986_v28 }
 0x35f   :  { %v2328_v38 = vpop.f32.mrf.mxu1 }
 0x360   :  { %v2329_v53 = vadd.f32 %v2328_v38, %v2039_v49  ;;  %v4280_v38 = vld [vmem:[%s5086_s8 + $0x70] sm:$0xff]  }
 0x361   :  { %v4273_v13 = vunpack.c.h.bf16 %v4280_v38 }
 0x364   :  { %v2289_v40 = vpop.f32.mrf.mxu2  ;;  %v2302_v36 = vpop.f32.mrf.mxu3 }
 0x365   :  { %v2290_v48 = vadd.f32 %v2289_v40, %v2038_v46  ;;  %v2522_v40 = vld [vmem:[%s5086_s8 + $0x7c] sm:$0x3] }
 0x367   :  { %v2330_v44 = vpop.f32.mrf.mxu1  ;;  %v2303_v26 = vadd.f32 %v2302_v36, %v2290_v48 }
 0x368   :  { %v4249_v44 = vunpack.c.h.bf16 %v4274_v42 }
 0x36c   :  { %v2291_v47 = vpop.f32.mrf.mxu2  ;;  %v2304_v5 = vpop.f32.mrf.mxu3 }
 0x36d   :  { %v2521_v47 = vld [vmem:[%s5086_s8 + $0x78] sm:$0xf]  ;;  %v4265_v5 = vunpack.c.h.bf16 %v4883_v37 }
 0x372   :  { %v2315_v50 = vpop.f32.mrf.mxu0 }
 0x373   :  { %v2316_v52 = vadd.f32 %v2315_v50, %v2303_v26  ;;  %v4275_v26 = vld [vmem:[%s5086_s8 + $0x20] sm:$0xff]   ;;  %v4272_v50 = vunpack.c.l.bf16 %v4280_v38 }
 0x374   :  { %v2341_v54 = vpop.f32.mrf.mxu2 }
 0x375   :  { %v2358_v55 = vmax.f32 %v2316_v52, 0.0  ;;  %v2342_v59 = vadd.f32 %v2341_v54, %v2329_v53  ;;  %v2554_v52 = vunpack.c.l.bf16 %v2522_v40 }
 0x377   :  { %v2360_v56 = vpack.c.bf16 %v2358_v55, %v2358_v55  ;;  %v2553_v55 = vunpack.c.l.bf16 %v2521_v47 }
 0x378   :  { %v2354_v60 = vpop.f32.mrf.mxu3 }
 0x379   :  { %v2355_v57 = vadd.f32 %v2354_v60, %v2342_v59  ;;  %2473 = vmatmul.bf16.vlgmr.msra.gmra.mxu0 %v2360_v56  ;;  %v2498_v59 = vld [vmem:[%s5086_s8 + $0x1c] sm:$0x3] }
 0x37a   :  { %v2317_v62 = vpop.f32.mrf.mxu0 }
 0x37b   :  { %v2359_v63 = vmax.f32 %v2355_v57, 0.0  ;;  %v4252_v57 = vunpack.c.l.bf16 %v4275_v26 }
 0x37c   :  { %v2343_v0 = vpop.f32.mrf.mxu2 }
 0x37d   :  { %v2361_v2 = vpack.c.bf16 %v2359_v63, %v2359_v63 }
 0x37f   :  { %3959 = vmatmul.msk.bf16.vlgmr.msrb.gmra.mxu1 %vm2461_vm3, %v2361_v2 }
 0x380   :  { %v2356_v3 = vpop.f32.mrf.mxu3 }
 0x3f6   :  { %v2474_v6 = vpop.f32.mrf.mxu0 }
 0x3f7   :  { %v2475_v9 = vadd.f32 %v2474_v6, %v2388_v7  ;;  %v2530_v6 = vunpack.c.l.bf16 %v2498_v59  ;;  %v4917_v7 = vld [vmem:[%s5086_s8 + $0x60] sm:$0xff]   ;;  %v4260_v59 = vunpack.c.l.bf16 %v4867_v25 }
 0x3fc   :  { %v2487_v45 = vpop.f32.mrf.mxu1 }
 0x3fd   :  { %v4854_v1 = vadd.f32 %v2487_v45, %v2475_v9 }
 0x3fe   :  { %v2476_v10 = vpop.f32.mrf.mxu0 }
 0x3ff   :  { %v2563_v16 = vperm.slane %v4854_v1, 0  ;;  %v2556_v18 = vrot.slane %v4854_v1, 1  ;;  %v2559_v22 = vrot.slane %v4854_v1, 4  ;;  %v2560_v31 = vrot.slane %v4854_v1, 5 }
 0x400   :  { %v2562_v46 = vrot.slane %v4854_v1, 7  ;;  %v2557_v53 = vrot.slane %v4854_v1, 2  ;;  %v2561_v62 = vrot.slane %v4854_v1, 6  ;;  %v4268_v10 = vunpack.c.l.bf16 %v4917_v7 }
 0x401   :  { %v2581_v19 = vmul.f32 %v2563_v16, %v2525_v51  ;;  %v2579_v21 = vmul.f32 %v4244_v12, %v2563_v16  ;;  %v4861_v15 = vperm.slane %v2556_v18, 0  ;;  %v4874_v30 = vperm.slane %v2559_v22, 0 }
 0x402   :  { %v2582_v32 = vmul.f32 %v2563_v16, %v2526_v23  ;;  %v2580_v33 = vmul.f32 %v4245_v29, %v2563_v16  ;;  %v4900_v49 = vperm.slane %v2560_v31, 0  ;;  %v2570_v60 = vperm.slane %v2562_v46, 0  ;;  %v2505_v46 = vld [vmem:[%s5086_s8 + $0x38] sm:$0xf] }
 0x403   :  { %v2618_v20 = vsel %vm2611_vm4, %v2581_v19, 0.0  ;;  %v2612_v27 = vsel %vm2611_vm4, %v2579_v21, 0.0  ;;  %v2583_v28 = vmul.f32 %v4248_v17, %v4861_v15  ;;  %v2596_v35 = vmul.f32 %v4261_v24, %v4874_v30  ;;  %v2517_v21 = vld [vmem:[%s5086_s8 + $0x68] sm:$0xf] }
 0x404   :  { %v2489_v58 = vpop.f32.mrf.mxu1  ;;  %2619 = vadd.xlane.f32.xlu2 %v2618_v20  ;;  %2613 = vadd.xlane.f32.xlu1 %v2612_v27  ;;  %v2622_v36 = vsel %vm2621_vm5, %v2582_v32, 0.0  ;;  %v2615_v43 = vsel %vm2611_vm4, %v2580_v33, 0.0  ;;  %v2585_v54 = vmul.f32 %v4861_v15, %v2529_v39  ;;  %v2584_v56 = vmul.f32 %v4249_v44, %v4861_v15  ;;  %v2502_v32 = vld [vmem:[%s5086_s8 + $0x2c] sm:$0x3] }
 0x405   :  { %v2625_v61 = vsel %vm2611_vm4, %v2583_v28, 0.0  ;;  %v2664_v48 = vsel %vm2611_vm4, %v2596_v35, 0.0  ;;  %v2600_v63 = vmul.f32 %v4265_v5, %v4900_v49  ;;  %v2608_v0 = vmul.f32 %v4273_v13, %v2570_v60  ;;  %v2518_v35 = vld [vmem:[%s5086_s8 + $0x6c] sm:$0x3] }
 0x406   :  { %2626 = vadd.xlane.f32.xlu0 %v2625_v61  ;;  %v2607_v2 = vmul.f32 %v4272_v50, %v2570_v60  ;;  %v2610_v3 = vmul.f32 %v2570_v60, %v2554_v52  ;;  %v2631_v4 = vsel %vm2611_vm4, %v2585_v54, 0.0  ;;  %v2565_v14 = vperm.slane %v2557_v53, 0  ;;  %v4276_v61 = vld [vmem:[%s5086_s8 + $0x30] sm:$0xff]   ;;  %v2506_v53 = vld [vmem:[%s5086_s8 + $0x3c] sm:$0x3] }
 0x407   :  { %v2609_v8 = vmul.f32 %v2570_v60, %v2553_v55  ;;  %v2628_v41 = vsel %vm2611_vm4, %v2584_v56, 0.0  ;;  %v4921_v9 = vsel %vm2611_vm4, %v2608_v0, 0.0  ;;  %v2676_v12 = vsel %vm2611_vm4, %v2600_v63, 0.0  ;;  %v2509_v63 = vld [vmem:[%s5086_s8 + $0x48] sm:$0xf] }
 0x408   :  { %v4924_v45 = vsel %vm2611_vm4, %v2607_v2, 0.0  ;;  %v4927_v42 = vsel %vm2621_vm5, %v2610_v3, 0.0  ;;  %v4934_v16 = vperm.slane %v2561_v62, 0  ;;  %v2587_v17 = vmul.f32 %v4252_v57, %v2565_v14 }
 0x409   :  { %v4930_v51 = vsel %vm2611_vm4, %v2609_v8, 0.0  ;;  %v2586_v18 = vmul.f32 %v4861_v15, %v2530_v6  ;;  %v2533_v20 = vunpack.c.l.bf16 %v2501_v11  ;;  %v4253_v27 = vunpack.c.h.bf16 %v4275_v26  ;;  %v2513_v6 = vld [vmem:[%s5086_s8 + $0x58] sm:$0xf]  ;;  %v2510_v8 = vld [vmem:[%s5086_s8 + $0x4c] sm:$0x3] }
 0x40a   :  { %v2603_v19 = vmul.f32 %v4268_v10, %v4934_v16  ;;  %v2637_v22 = vsel %vm2611_vm4, %v2587_v17, 0.0  ;;  %v2549_v28 = vunpack.c.l.bf16 %v2517_v21  ;;  %v2558_v24 = vrot.slane %v4854_v1, 3  ;;  %v2514_v11 = vld [vmem:[%s5086_s8 + $0x5c] sm:$0x3] }
 0x40b   :  { %v2634_v23 = vsel %vm2621_vm5, %v2586_v18, 0.0  ;;  %v2589_v29 = vmul.f32 %v2565_v14, %v2533_v20  ;;  %v2588_v58 = vmul.f32 %v4253_v27, %v2565_v14  ;;  %v4256_v34 = vunpack.c.l.bf16 %v4276_v61 }
 0x40c   :  { %2623 = vadd.xlane.f32.xlu2 %v2622_v36  ;;  %2616 = vadd.xlane.f32.xlu1 %v2615_v43  ;;  %v2685_v15 = vsel %vm2611_vm4, %v2603_v19, 0.0  ;;  %v2605_v33 = vmul.f32 %v4934_v16, %v2549_v28  ;;  %v2566_v39 = vperm.slane %v2558_v24, 0  ;;  %v2534_v40 = vunpack.c.l.bf16 %v2502_v32 }
 0x40d   :  { %v2643_v31 = vsel %vm2611_vm4, %v2589_v29, 0.0  ;;  %v2640_v38 = vsel %vm2611_vm4, %v2588_v58, 0.0  ;;  %v2550_v36 = vunpack.c.l.bf16 %v2518_v35  ;;  %v4257_v26 = vunpack.c.h.bf16 %v4276_v61 }
 0x40e   :  { %2665 = vadd.xlane.f32.xlu0 %v2664_v48  ;;  %v2691_v1 = vsel %vm2611_vm4, %v2605_v33, 0.0  ;;  %v2591_v43 = vmul.f32 %v4256_v34, %v2566_v39  ;;  %v2590_v44 = vmul.f32 %v2565_v14, %v2534_v40  ;;  %v2537_v48 = vunpack.c.l.bf16 %v2505_v46 }
 0x40f   :  { %v2606_v47 = vmul.f32 %v4934_v16, %v2550_v36  ;;  %v2592_v54 = vmul.f32 %v4257_v26, %v2566_v39  ;;  %v2538_v60 = vunpack.c.l.bf16 %v2506_v53  ;;  %v2595_v57 = vmul.f32 %v4260_v59, %v4874_v30 }
 0x410   :  { %v2649_v5 = vsel %vm2611_vm4, %v2591_v43, 0.0  ;;  %v2646_v13 = vsel %vm2621_vm5, %v2590_v44, 0.0  ;;  %v2593_v52 = vmul.f32 %v2566_v39, %v2537_v48  ;;  %v4264_v3 = vunpack.c.l.bf16 %v4883_v37 }
 0x411   :  { %v2694_v50 = vsel %vm2621_vm5, %v2606_v47, 0.0  ;;  %v2652_v56 = vsel %vm2611_vm4, %v2592_v54, 0.0  ;;  %v2594_v62 = vmul.f32 %v2566_v39, %v2538_v60  ;;  %v2661_v0 = vsel %vm2611_vm4, %v2595_v57, 0.0 }
 0x412   :  { %v2655_v55 = vsel %vm2611_vm4, %v2593_v52, 0.0  ;;  %v2599_v25 = vmul.f32 %v4264_v3, %v4900_v49  ;;  %v2545_v37 = vunpack.c.l.bf16 %v2513_v6  ;;  %v2542_v10 = vunpack.c.l.bf16 %v2510_v8 }
 0x413   :  { %v2658_v2 = vsel %vm2621_vm5, %v2594_v62, 0.0 }
 0x414   :  { %2632 = vadd.xlane.f32.xlu2 %v2631_v4  ;;  %2629 = vadd.xlane.f32.xlu1 %v2628_v41  ;;  %v2541_v4 = vunpack.c.l.bf16 %v2509_v63  ;;  %v2673_v41 = vsel %vm2611_vm4, %v2599_v25, 0.0  ;;  %v2601_v17 = vmul.f32 %v4900_v49, %v2545_v37  ;;  %v2598_v18 = vmul.f32 %v4874_v30, %v2542_v10 }
 0x416   :  { %2677 = vadd.xlane.f32.xlu0 %v2676_v12  ;;  %v2597_v14 = vmul.f32 %v4874_v30, %v2541_v4  ;;  %v2679_v19 = vsel %vm2611_vm4, %v2601_v17, 0.0  ;;  %v2670_v21 = vsel %vm2621_vm5, %v2598_v18, 0.0 }
 0x418   :  { %v2667_v12 = vsel %vm2611_vm4, %v2597_v14, 0.0 }
 0x41c   :  { %2638 = vadd.xlane.f32.xlu2 %v2637_v22  ;;  %2635 = vadd.xlane.f32.xlu1 %v2634_v23  ;;  %v2546_v22 = vunpack.c.l.bf16 %v2514_v11  ;;  %v4269_v23 = vunpack.c.h.bf16 %v4917_v7  ;;  %v2741_v7 = vlaneseq }
 0x41e   :  { %2686 = vadd.xlane.f32.xlu0 %v2685_v15  ;;  %v2602_v20 = vmul.f32 %v4900_v49, %v2546_v22  ;;  %v2604_v27 = vmul.f32 %v4269_v23, %v4934_v16  ;;  %v5007_v49 = vand.u32 127, %v2741_v7 }
 0x420   :  { %v2682_v15 = vsel %vm2621_vm5, %v2602_v20, 0.0  ;;  %v2688_v30 = vsel %vm2611_vm4, %v2604_v27, 0.0  ;;  %v5010_v16 = vadd.s32 4294967288, %v5007_v49  ;;  %v5013_v58 = vadd.s32 4294967280, %v5007_v49 }
 0x421   :  { %v5016_v61 = vadd.s32 4294967272, %v5007_v49 }
 0x424   :  { %2644 = vadd.xlane.f32.xlu2 %v2643_v31  ;;  %2641 = vadd.xlane.f32.xlu1 %v2640_v38 }
 0x426   :  { %2692 = vadd.xlane.f32.xlu0 %v2691_v1 }
 0x42c   :  { %2650 = vadd.xlane.f32.xlu2 %v2649_v5  ;;  %2647 = vadd.xlane.f32.xlu1 %v2646_v13 }
 0x42e   :  { %2695 = vadd.xlane.f32.xlu0 %v2694_v50 }
 0x434   :  { %2656 = vadd.xlane.f32.xlu2 %v2655_v55  ;;  %2653 = vadd.xlane.f32.xlu1 %v2652_v56 }
 0x43c   :  { %2662 = vadd.xlane.f32.xlu2 %v2661_v0  ;;  %2659 = vadd.xlane.f32.xlu1 %v2658_v2 }
 0x444   :  { %2674 = vadd.xlane.f32.xlu2 %v2673_v41  ;;  %2668 = vadd.xlane.f32.xlu1 %v2667_v12 }
 0x44c   :  { %2680 = vadd.xlane.f32.xlu2 %v2679_v19  ;;  %2671 = vadd.xlane.f32.xlu1 %v2670_v21 }
 0x454   :  { %2683 = vadd.xlane.f32.xlu2 %v2682_v15  ;;  %2689 = vadd.xlane.f32.xlu1 %v2688_v30 }
 0x45c   :  { %2701 = vadd.xlane.f32.xlu2 %v4921_v9  ;;  %2698 = vadd.xlane.f32.xlu1 %v4924_v45 }
 0x464   :  { %2707 = vadd.xlane.f32.xlu2 %v4927_v42  ;;  %2704 = vadd.xlane.f32.xlu1 %v4930_v51 }
 0x477   :  { %v2620_v28 = vpop.xlane.xlu2 %2619  ;;  %v2614_v29 = vpop.xlane.xlu1 %2613 }
 0x478   :  { %v2743_v42 = vperm.slane %v2614_v29, %v5007_v49  ;;  %v2749_v24 = vperm.slane %v2620_v28, %v5013_v58 }
 0x479   :  { %v2627_v31 = vpop.xlane.xlu0 %2626 }
 0x47a   :  { %v2756_v40 = vperm.slane %v2627_v31, %v5007_v49 }
 0x47f   :  { %v2624_v9 = vpop.xlane.xlu2 %2623  ;;  %v2617_v45 = vpop.xlane.xlu1 %2616 }
 0x480   :  { %v2745_v51 = vperm.slane %v2617_v45, %v5010_v16  ;;  %v2753_v32 = vperm.slane %v2624_v9, %v5016_v61 }
 0x481   :  { %v2666_v3 = vpop.xlane.xlu0 %2665 }
 0x482   :  { %v2747_v33 = vsel %vm2746_vm6, %v2745_v51, %v2743_v42  ;;  %v2778_v29 = vperm.slane %v2666_v3, %v5010_v16 }
 0x483   :  { %v2751_v34 = vsel %vm2750_vm7, %v2749_v24, %v2747_v33 }
 0x484   :  { %v2755_v35 = vsel %vm2754_vm8, %v2753_v32, %v2751_v34 }
 0x487   :  { %v2633_v38 = vpop.xlane.xlu2 %2632  ;;  %v2630_v39 = vpop.xlane.xlu1 %2629 }
 0x488   :  { %v2759_v1 = vperm.slane %v2633_v38, %v5013_v58  ;;  %v2757_v36 = vperm.slane %v2630_v39, %v5010_v16 }
 0x489   :  { %v2678_v14 = vpop.xlane.xlu0 %2677 }
 0x48a   :  { %v2758_v43 = vsel %vm2746_vm6, %v2757_v36, %v2756_v40  ;;  %v2785_v51 = vperm.slane %v2678_v14, %v5010_v16 }
 0x48b   :  { %v2760_v44 = vsel %vm2750_vm7, %v2759_v1, %v2758_v43 }
 0x48f   :  { %v2639_v46 = vpop.xlane.xlu2 %2638  ;;  %v2636_v47 = vpop.xlane.xlu1 %2635 }
 0x490   :  { %v2761_v5 = vperm.slane %v2636_v47, %v5016_v61  ;;  %v2763_v54 = vperm.slane %v2639_v46, %v5007_v49 }
 0x491   :  { %v2687_v41 = vpop.xlane.xlu0 %2686 }
 0x492   :  { %v2762_v13 = vsel %vm2754_vm8, %v2761_v5, %v2760_v44  ;;  %v2791_v9 = vperm.slane %v2687_v41, %v5007_v49 }
 0x493   :  { %v2806_v48 = vsel %vm2805_vm9, %v2762_v13, %v2755_v35 }
 0x497   :  { %v2645_v26 = vpop.xlane.xlu2 %2644  ;;  %v2642_v50 = vpop.xlane.xlu1 %2641 }
 0x498   :  { %v2764_v52 = vperm.slane %v2642_v50, %v5010_v16  ;;  %v2766_v53 = vperm.slane %v2645_v26, %v5013_v58 }
 0x499   :  { %v2693_v18 = vpop.xlane.xlu0 %2692 }
 0x49a   :  { %v2765_v55 = vsel %vm2746_vm6, %v2764_v52, %v2763_v54  ;;  %v2794_v35 = vperm.slane %v2693_v18, %v5013_v58 }
 0x49b   :  { %v2767_v57 = vsel %vm2750_vm7, %v2766_v53, %v2765_v55 }
 0x49f   :  { %v2651_v56 = vpop.xlane.xlu2 %2650  ;;  %v2648_v59 = vpop.xlane.xlu1 %2647 }
 0x4a0   :  { %v2768_v60 = vperm.slane %v2648_v59, %v5016_v61  ;;  %v2770_v19 = vperm.slane %v2651_v56, %v5007_v49 }
 0x4a1   :  { %v2696_v31 = vpop.xlane.xlu0 %2695 }
 0x4a2   :  { %v2769_v62 = vsel %vm2754_vm8, %v2768_v60, %v2767_v57  ;;  %v2796_v5 = vperm.slane %v2696_v31, %v5016_v61 }
 0x4a3   :  { %v2808_v63 = vsel %vm2807_vm10, %v2769_v62, %v2806_v48 }
 0x4a7   :  { %v2657_v0 = vpop.xlane.xlu2 %2656  ;;  %v2654_v2 = vpop.xlane.xlu1 %2653 }
 0x4a8   :  { %v2771_v11 = vperm.slane %v2654_v2, %v5010_v16  ;;  %v2773_v21 = vperm.slane %v2657_v0, %v5013_v58 }
 0x4aa   :  { %v2772_v20 = vsel %vm2746_vm6, %v2771_v11, %v2770_v19 }
 0x4ab   :  { %v2774_v33 = vsel %vm2750_vm7, %v2773_v21, %v2772_v20 }
 0x4af   :  { %v2663_v4 = vpop.xlane.xlu2 %2662  ;;  %v2660_v25 = vpop.xlane.xlu1 %2659 }
 0x4b0   :  { %v2777_v22 = vperm.slane %v2663_v4, %v5007_v49  ;;  %v2775_v27 = vperm.slane %v2660_v25, %v5016_v61 }
 0x4b2   :  { %v2779_v32 = vsel %vm2746_vm6, %v2778_v29, %v2777_v22  ;;  %v2776_v38 = vsel %vm2754_vm8, %v2775_v27, %v2774_v33 }
 0x4b3   :  { %v2810_v13 = vsel %vm2809_vm11, %v2776_v38, %v2808_v63 }
 0x4b7   :  { %v2675_v6 = vpop.xlane.xlu2 %2674  ;;  %v2669_v8 = vpop.xlane.xlu1 %2668 }
 0x4b8   :  { %v2784_v15 = vperm.slane %v2675_v6, %v5007_v49  ;;  %v2780_v30 = vperm.slane %v2669_v8, %v5013_v58 }
 0x4ba   :  { %v2786_v39 = vsel %vm2746_vm6, %v2785_v51, %v2784_v15  ;;  %v2781_v40 = vsel %vm2750_vm7, %v2780_v30, %v2779_v32 }
 0x4bf   :  { %v2681_v12 = vpop.xlane.xlu2 %2680  ;;  %v2672_v37 = vpop.xlane.xlu1 %2671 }
 0x4c0   :  { %v2787_v45 = vperm.slane %v2681_v12, %v5013_v58  ;;  %v2782_v42 = vperm.slane %v2672_v37, %v5016_v61 }
 0x4c2   :  { %v2788_v1 = vsel %vm2750_vm7, %v2787_v45, %v2786_v39  ;;  %v2783_v36 = vsel %vm2754_vm8, %v2782_v42, %v2781_v40 }
 0x4c3   :  { %v2812_v48 = vsel %vm2811_vm12, %v2783_v36, %v2810_v13 }
 0x4c7   :  { %v2684_v10 = vpop.xlane.xlu2 %2683  ;;  %v2690_v17 = vpop.xlane.xlu1 %2689 }
 0x4c8   :  { %v2792_v23 = vperm.slane %v2690_v17, %v5010_v16  ;;  %v2789_v24 = vperm.slane %v2684_v10, %v5016_v61 }
 0x4ca   :  { %v2793_v34 = vsel %vm2746_vm6, %v2792_v23, %v2791_v9  ;;  %v2790_v43 = vsel %vm2754_vm8, %v2789_v24, %v2788_v1 }
 0x4cb   :  { %v2795_v44 = vsel %vm2750_vm7, %v2794_v35, %v2793_v34  ;;  %v2814_v52 = vsel %vm2813_vm13, %v2790_v43, %v2812_v48 }
 0x4cc   :  { %v2797_v54 = vsel %vm2754_vm8, %v2796_v5, %v2795_v44 }
 0x4cd   :  { %v2816_v59 = vsel %vm2815_vm14, %v2797_v54, %v2814_v52 }
 0x4cf   :  { %v2702_v7 = vpop.xlane.xlu2 %2701  ;;  %v2699_v28 = vpop.xlane.xlu1 %2698 }
 0x4d0   :  { %v2799_v46 = vperm.slane %v2702_v7, %v5010_v16  ;;  %v2798_v47 = vperm.slane %v2699_v28, %v5007_v49 }
 0x4d2   :  { %v2800_v56 = vsel %vm2746_vm6, %v2799_v46, %v2798_v47 }
 0x4d7   :  { %v2708_v26 = vpop.xlane.xlu2 %2707  ;;  %v2705_v50 = vpop.xlane.xlu1 %2704 }
 0x4d8   :  { %v2803_v53 = vperm.slane %v2708_v26, %v5016_v61  ;;  %v2801_v55 = vperm.slane %v2705_v50, %v5013_v58 }
 0x4da   :  { %v2802_v49 = vsel %vm2750_vm7, %v2801_v55, %v2800_v56 }
 0x4db   :  { %v2804_v16 = vsel %vm2754_vm8, %v2803_v53, %v2802_v49 }
 0x4dc   :  { %v2818_v60 = vsel %vm2817_vm15, %v2804_v16, %v2816_v59 }
 0x4dd   :  { %v2821_v57 = vsel %vm2820_vm0, %v2818_v60, 0.0 }
 0x4de   :  { %2822 = vst [vmem:[%s5087_s9] sm:$0xff] %v2821_v57 }
 0x4df   :  { %2827 = vsyncpa [#allocation3], 1 }

</bundles_post_ra>
